<compile_context>
chip_gen: v6e
topology: v6e:2x2x1
jax: 0.10.0
libtpu: 0.0.40
codegen_flags: <defaults>
</compile_context>

<pallas_src>
import math
from functools import partial

import jax
import jax.numpy as jnp
from jax import lax
from jax.experimental import pallas as pl
from jax.experimental.pallas import tpu as pltpu


# ----------------------------------------------------------------------------- utils
def _same_pad(L, k, s):
    """PyTorch-I3D 'same' padding (front, back)."""
    if L % s == 0:
        p = max(k - s, 0)
    else:
        p = max(k - (L % s), 0)
    return (p // 2, p - p // 2)


def _choose_tile(size, cands, max_waste):
    """Largest tile whose zero-padding waste is acceptable; else the min-padding tile."""
    for c in cands:                                   # cands sorted descending
        padded = -(-size // c) * c
        if (padded - size) / padded <= max_waste:
            return c
    return min(cands, key=lambda c: (-(-size // c) * c, -c))


# ------------------------------------------------------------------- Pallas matmul kernel
def _matmul_kernel(x_ref, w_ref, scale_ref, shift_ref, o_ref, acc_ref, *, apply_relu):
    @pl.when(pl.program_id(2) == 0)
    def _():
        acc_ref[...] = jnp.zeros_like(acc_ref)

    # bf16 operands on the MXU, f32 accumulation.
    acc_ref[...] += jnp.dot(x_ref[...], w_ref[...], preferred_element_type=jnp.float32)

    @pl.when(pl.program_id(2) == pl.num_programs(2) - 1)
    def _():
        y = acc_ref[...] * scale_ref[...] + shift_ref[...]
        if apply_relu:
            y = jnp.maximum(y, 0.0)
        o_ref[...] = y.astype(o_ref.dtype)


@partial(jax.jit, static_argnames=("apply_relu", "out_dtype"))
def matmul_scale_shift(x, w, scale, shift, *, apply_relu, out_dtype):
    """act((x @ w) * scale + shift); x:(M,K) w:(K,N) scale/shift:(N,); bf16 MXU, f32 acc."""
    M, K = x.shape
    _, N = w.shape
    tm = _choose_tile(M, (512, 256, 128, 64, 32, 16, 8), 0.3)
    tk = _choose_tile(K, (512, 384, 256, 128), 0.12)
    tn = _choose_tile(N, (256, 128), 0.3)
    Mp, Kp, Np = -(-M // tm) * tm, -(-K // tk) * tk, -(-N // tn) * tn
    x = x.astype(jnp.bfloat16)
    w = w.astype(jnp.bfloat16)
    if (Mp, Kp) != (M, K):
        x = jnp.pad(x, ((0, Mp - M), (0, Kp - K)))
    if (Kp, Np) != (K, N):
        w = jnp.pad(w, ((0, Kp - K), (0, Np - N)))
    s = jnp.pad(scale.astype(jnp.float32).reshape(1, N), ((0, 0), (0, Np - N)))
    b = jnp.pad(shift.astype(jnp.float32).reshape(1, N), ((0, 0), (0, Np - N)))
    out = pl.pallas_call(
        partial(_matmul_kernel, apply_relu=apply_relu),
        out_shape=jax.ShapeDtypeStruct((Mp, Np), out_dtype),
        grid_spec=pltpu.PrefetchScalarGridSpec(
            num_scalar_prefetch=0,
            grid=(Mp // tm, Np // tn, Kp // tk),
            in_specs=[
                pl.BlockSpec((tm, tk), lambda i, j, k: (i, k)),
                pl.BlockSpec((tk, tn), lambda i, j, k: (k, j)),
                pl.BlockSpec((1, tn), lambda i, j, k: (0, j)),
                pl.BlockSpec((1, tn), lambda i, j, k: (0, j)),
            ],
            out_specs=pl.BlockSpec((tm, tn), lambda i, j, k: (i, j)),
            scratch_shapes=[pltpu.VMEM((tm, tn), jnp.float32)]),
        compiler_params=pltpu.CompilerParams(
            dimension_semantics=("parallel", "parallel", "arbitrary")),
    )(x, w, s, b)
    if (Mp, Np) != (M, N):
        out = out[:M, :N]
    return out


# --------------------------------------------------------------- Pallas window reduction
def _pool_max_kernel(x_ref, o_ref):
    o_ref[...] = jnp.max(x_ref[...], axis=0)


def _pool_mean_kernel(x_ref, o_ref, *, inv_k):
    o_ref[...] = (jnp.sum(x_ref[...].astype(jnp.float32), axis=0) * inv_k).astype(o_ref.dtype)


@partial(jax.jit, static_argnames=("op",))
def window_reduce(stacked, op):
    """Reduce a (Kwin, M, C) window stack over axis 0 with max or mean (lane dim = C)."""
    Kwin, M, C = stacked.shape
    # full-C lane-dense blocks, large row tiles bounded by a ~2 MiB VMEM budget per block
    budget = (2 * 1024 * 1024) // max(1, Kwin * C * stacked.dtype.itemsize)
    cands = tuple(t for t in (512, 256, 128, 64, 32, 16, 8) if t <= max(8, budget))
    tm = _choose_tile(M, cands, 0.3)
    Mp = -(-M // tm) * tm
    if Mp != M:
        stacked = jnp.pad(stacked, ((0, 0), (0, Mp - M), (0, 0)))
    kern = _pool_max_kernel if op == "max" else partial(_pool_mean_kernel, inv_k=1.0 / Kwin)
    out = pl.pallas_call(
        kern,
        out_shape=jax.ShapeDtypeStruct((Mp, C), stacked.dtype),
        grid=(Mp // tm,),
        in_specs=[pl.BlockSpec((Kwin, tm, C), lambda i: (0, i, 0))],
        out_specs=pl.BlockSpec((tm, C), lambda i: (i, 0)),
        compiler_params=pltpu.CompilerParams(dimension_semantics=("parallel",)),
    )(stacked)
    return out[:M] if Mp != M else out


# -------------------------------------------------------------------------- pooling glue
def _window_stack(xpad, kernel, stride, out_dims, axis):
    """Strided-slice window stack for channels-last (B, T, H, W, C) tensors."""
    kt, kh, kw = kernel
    st, sh, sw = stride
    ot, oh, ow = out_dims
    taps = []
    for a in range(kt):
        for b in range(kh):
            for c in range(kw):
                taps.append(xpad[:, a:a + (ot - 1) * st + 1:st,
                                    b:b + (oh - 1) * sh + 1:sh,
                                    c:c + (ow - 1) * sw + 1:sw, :])
    return jnp.stack(taps, axis=axis)


def maxpool3d_same(x, kernel, stride):
    """MaxPool3dSamePadding equivalent (channels-last).  F.pad pads zeros like the reference."""
    B, T, H, W, C = x.shape
    (kt, kh, kw), (st, sh, sw) = kernel, stride
    pt, ph, pw = _same_pad(T, kt, st), _same_pad(H, kh, sh), _same_pad(W, kw, sw)
    ot = (T + sum(pt) - kt) // st + 1
    oh = (H + sum(ph) - kh) // sh + 1
    ow = (W + sum(pw) - kw) // sw + 1
    # TODO(synk): the window stack still materializes Kwin copies in HBM; a fully fused
    # in-VMEM shifted-slice pooling kernel would remove this remaining glue traffic.
    xpad = jnp.pad(x, ((0, 0), pt, ph, pw, (0, 0)))
    stacked = _window_stack(xpad, kernel, stride, (ot, oh, ow), axis=0)
    red = window_reduce(stacked.reshape(kt * kh * kw, B * ot * oh * ow, C), "max")
    return red.reshape(B, ot, oh, ow, C)


def avgpool3d(x, kernel, stride=(1, 1, 1)):
    """nn.AvgPool3d (no padding) equivalent (channels-last)."""
    B, T, H, W, C = x.shape
    (kt, kh, kw), (st, sh, sw) = kernel, stride
    ot = (T - kt) // st + 1
    oh = (H - kh) // sh + 1
    ow = (W - kw) // sw + 1
    stacked = _window_stack(x, kernel, stride, (ot, oh, ow), axis=0)
    red = window_reduce(stacked.reshape(kt * kh * kw, B * ot * oh * ow, C), "mean")
    return red.reshape(B, ot, oh, ow, C)


# --------------------------------------------------------------------------- Unit3D
def unit3d(x, p, kernel_shape, stride=(1, 1, 1), relu=True, out_dtype=jnp.bfloat16):
    """Conv3d + folded eval-mode BN + ReLU, channels-last, via one Pallas matmul."""
    B, T, H, W, C = x.shape
    (kt, kh, kw), (st, sh, sw) = kernel_shape, stride
    if (kt, kh, kw) == (1, 1, 1) and (st, sh, sw) == (1, 1, 1):
        ot, oh, ow = T, H, W
        patches = x.reshape(B * T * H * W, C)                 # free in channels-last
    else:
        pt, ph, pw = _same_pad(T, kt, st), _same_pad(H, kh, sh), _same_pad(W, kw, sw)
        ot = (T + sum(pt) - kt) // st + 1
        oh = (H + sum(ph) - kh) // sh + 1
        ow = (W + sum(pw) - kw) // sw + 1
        xpad = jnp.pad(x, ((0, 0), pt, ph, pw, (0, 0)))
        # TODO(synk): im2col patches are still materialized in HBM; a tap-accumulating
        # BlockSpec conv (tap as an extra 'arbitrary' grid axis reading shifted windows)
        # would remove this remaining glue traffic.
        patches = _window_stack(xpad, kernel_shape, stride, (ot, oh, ow), axis=4)
        patches = patches.reshape(B * ot * oh * ow, kt * kh * kw * C)
    y = matmul_scale_shift(patches, p["w"], p["scale"], p["shift"],
                           apply_relu=relu, out_dtype=out_dtype)
    return y.reshape(B, ot, oh, ow, -1)


def inception_forward(x, p):
    B, T, H, W, C = x.shape
    flat = x.reshape(B * T * H * W, C)
    # b0 / b1a / b2a 1x1 convs share the same LHS -> fused into ONE lane-dense matmul
    fused = matmul_scale_shift(flat, p["p1"]["w"], p["p1"]["scale"], p["p1"]["shift"],
                               apply_relu=True, out_dtype=jnp.bfloat16)
    n0, n1a, n2a = p["splits"]
    b0 = fused[:, :n0].reshape(B, T, H, W, n0)
    b1a = fused[:, n0:n0 + n1a].reshape(B, T, H, W, n1a)
    b2a = fused[:, n0 + n1a:].reshape(B, T, H, W, n2a)
    b1 = unit3d(b1a, p["b1b"], (3, 3, 3))
    b2 = unit3d(b2a, p["b2b"], (3, 3, 3))
    b3 = unit3d(maxpool3d_same(x, (3, 3, 3), (1, 1, 1)), p["b3b"], (1, 1, 1))
    return jnp.concatenate([b0, b1, b2, b3], axis=-1)         # channel concat = lane concat


def i3d_extract_endpoints(x, p, points):
    out = {}

    def rec(name, v):
        if name in points:
            out[name] = v

    x = unit3d(x, p["Conv3d_1a_7x7"], (7, 7, 7), (2, 2, 2)); rec("Conv3d_1a_7x7", x)
    x = maxpool3d_same(x, (1, 3, 3), (1, 2, 2)); rec("MaxPool3d_2a_3x3", x)
    x = unit3d(x, p["Conv3d_2b_1x1"], (1, 1, 1)); rec("Conv3d_2b_1x1", x)
    x = unit3d(x, p["Conv3d_2c_3x3"], (3, 3, 3)); rec("Conv3d_2c_3x3", x)
    x = maxpool3d_same(x, (1, 3, 3), (1, 2, 2)); rec("MaxPool3d_3a_3x3", x)
    for name in ("Mixed_3b", "Mixed_3c"):
        x = inception_forward(x, p[name]); rec(name, x)
    x = maxpool3d_same(x, (3, 3, 3), (2, 2, 2)); rec("MaxPool3d_4a_3x3", x)
    for name in ("Mixed_4b", "Mixed_4c", "Mixed_4d", "Mixed_4e", "Mixed_4f"):
        x = inception_forward(x, p[name]); rec(name, x)
    x = maxpool3d_same(x, (2, 2, 2), (2, 2, 2)); rec("MaxPool3d_5a_2x2", x)
    for name in ("Mixed_5b", "Mixed_5c"):
        x = inception_forward(x, p[name]); rec(name, x)
    if "Logits" in points:
        # avg_pool -> dropout (eval: identity) -> 1x1 logits conv -> spatial squeeze
        lx = avgpool3d(x, (2, 7, 7), (1, 1, 1))
        lx = unit3d(lx, p["logits"], (1, 1, 1), relu=False, out_dtype=jnp.float32)
        out["Logits"] = jnp.squeeze(lx, axis=(2, 3))           # (B, T', num_classes)
    # NOTE: the reference computes the Logits head even when unused; that dead compute
    # is elided here (it never contributes to the returned endpoints).
    return out


# -------------------------------------------------- pose-guided pooling (LayersPoseLocalI3d)
def get_final_vector(img_thw, x_poses, fmap):
    """Pose-guided gather; fmap is channels-last (B, temp, hmap, wmap, ch)."""
    # TODO(synk): data-dependent tiny gather kept in plain JAX (no clean tiled Pallas form).
    B, temp, hmap, wmap, ch = fmap.shape
    T, H, W = img_thw
    t_idx = jnp.array([i * (T // temp) + T // (2 * temp) for i in range(temp)], jnp.int32)
    pc = x_poses[:, t_idx]                                    # (B, temp, J, 2)
    pc = pc * jnp.array([wmap / W, hmap / H], jnp.float32)    # [1/ratios[2], 1/ratios[1]]
    pc = pc.astype(jnp.int32)
    # matches the reference: both coords clamped against hmap only, no negative clamp
    pc = jnp.where(pc >= hmap, hmap - 1, pc)
    x_idx, y_idx = pc[..., 0], pc[..., 1]                     # (B, temp, J)
    bb = jnp.arange(B)[:, None, None]
    tt = jnp.arange(temp)[None, :, None]
    return fmap[bb, tt, y_idx, x_idx]                         # (B, temp, J, ch)


def adaptive_max_pool_tj(x, out_t, out_j):
    """nn.AdaptiveMaxPool2d((out_t, out_j)) over axes (1, 2) of (B, temp, J, ch)."""
    def pool_axis(y, axis, out):
        n = y.shape[axis]
        parts = []
        for i in range(out):
            s = (i * n) // out
            e = -((-(i + 1) * n) // out)                      # ceil
            parts.append(jnp.max(lax.slice_in_dim(y, s, e, axis=axis),
                                 axis=axis, keepdims=True))
        return jnp.concatenate(parts, axis=axis)
    return pool_axis(pool_axis(x, 1, out_t), 2, out_j)


def layers_pose_local_i3d_forward(params, x, endpoints, num_classes):
    x_poses = x["poses"][:, :, :2]            # first two joints -> (B, T, 2, 2)
    frames = x["frames"]                      # (B, 3, T, H, W), PyTorch NCDHW input
    B, _, T, H, W = frames.shape
    xl = jnp.transpose(frames, (0, 2, 3, 4, 1)).astype(jnp.bfloat16)   # -> NDHWC bf16
    fmaps = i3d_extract_endpoints(xl, params["i3d"], endpoints)
    layer_vects = []
    for k in endpoints:
        if k == "Logits":
            # already (B, T', num_classes) == torch's fmaps['Logits'].transpose(-2, -1)
            layer_vects.append(fmaps[k].astype(jnp.float32))
            continue
        fm = maxpool3d_same(fmaps[k], (3, 3, 3), (1, 1, 1))
        fts = get_final_vector((T, H, W), x_poses, fm)        # (B, temp, J, ch)
        fts = adaptive_max_pool_tj(fts, 7, 2)                 # (B, 7, 2, ch)
        # dropout: identity (eval).  Match torch's (ch, joint) flatten order.
        fts = jnp.transpose(fts, (0, 1, 3, 2)).reshape(B, 7, -1)
        fcp = params["fc"][k]
        logits = matmul_scale_shift(fts.reshape(B * 7, -1), fcp["w"], fcp["scale"],
                                    fcp["b"], apply_relu=False,
                                    out_dtype=jnp.float32).reshape(B, 7, num_classes)
        layer_vects.append(logits)
    lts = jnp.mean(jnp.stack(layer_vects, axis=0), axis=0)
    return jnp.swapaxes(lts, -2, -1)                          # (B, num_classes, 7)


# ----------------------------------------------------------------------------- params
def _init_unit(key, in_c, out_c, kshape, use_bn=True, use_bias=False):
    # TODO(synk): pretrained checkpoint loading replaced by deterministic random init.
    kt, kh, kw = kshape
    K = in_c * kt * kh * kw
    w = jax.random.normal(key, (kt, kh, kw, in_c, out_c), jnp.float32) * math.sqrt(2.0 / K)
    p = {"w": w.reshape(K, out_c).astype(jnp.bfloat16)}       # im2col / matmul layout
    if use_bn:
        # eval-mode BN (gamma=1, beta=0, running mean=0, var=1, eps=1e-3) folded in
        p["scale"] = jnp.full((out_c,), 1.0 / math.sqrt(1.0 + 1e-3), jnp.float32)
        p["shift"] = jnp.zeros((out_c,), jnp.float32)
    else:
        p["scale"] = jnp.ones((out_c,), jnp.float32)
        p["shift"] = jnp.zeros((out_c,), jnp.float32)         # conv bias (zero init)
    return p


def _init_inception(key, in_c, oc):
    k = jax.random.split(key, 6)
    b0 = _init_unit(k[0], in_c, oc[0], (1, 1, 1))
    b1a = _init_unit(k[1], in_c, oc[1], (1, 1, 1))
    b2a = _init_unit(k[3], in_c, oc[3], (1, 1, 1))
    fused = {"w": jnp.concatenate([b0["w"], b1a["w"], b2a["w"]], axis=1),
             "scale": jnp.concatenate([b0["scale"], b1a["scale"], b2a["scale"]]),
             "shift": jnp.concatenate([b0["shift"], b1a["shift"], b2a["shift"]])}
    return {"p1": fused, "splits": (oc[0], oc[1], oc[3]),
            "b1b": _init_unit(k[2], oc[1], oc[2], (3, 3, 3)),
            "b2b": _init_unit(k[4], oc[3], oc[4], (3, 3, 3)),
            "b3b": _init_unit(k[5], in_c, oc[5], (1, 1, 1))}


def init_params(key, num_classes, in_channels=3, endpoints=("Mixed_4f", "Mixed_5c")):
    keys = jax.random.split(key, 24)
    i3d = {
        "Conv3d_1a_7x7": _init_unit(keys[0], in_channels, 64, (7, 7, 7)),
        "Conv3d_2b_1x1": _init_unit(keys[1], 64, 64, (1, 1, 1)),
        "Conv3d_2c_3x3": _init_unit(keys[2], 64, 192, (3, 3, 3)),
        "Mixed_3b": _init_inception(keys[3], 192, [64, 96, 128, 16, 32, 32]),
        "Mixed_3c": _init_inception(keys[4], 256, [128, 128, 192, 32, 96, 64]),
        "Mixed_4b": _init_inception(keys[5], 480, [192, 96, 208, 16, 48, 64]),
        "Mixed_4c": _init_inception(keys[6], 512, [160, 112, 224, 24, 64, 64]),
        "Mixed_4d": _init_inception(keys[7], 512, [128, 128, 256, 24, 64, 64]),
        "Mixed_4e": _init_inception(keys[8], 512, [112, 144, 288, 32, 64, 64]),
        "Mixed_4f": _init_inception(keys[9], 528, [256, 160, 320, 32, 128, 128]),
        "Mixed_5b": _init_inception(keys[10], 832, [256, 160, 320, 32, 128, 128]),
        "Mixed_5c": _init_inception(keys[11], 832, [384, 192, 384, 48, 128, 128]),
        "logits": _init_unit(keys[12], 1024, num_classes, (1, 1, 1),
                             use_bn=False, use_bias=True),
    }
    ep_dict = {"Mixed_3b": 256, "Mixed_3c": 480, "Mixed_4b": 512, "Mixed_4c": 512,
               "Mixed_4d": 512, "Mixed_4e": 528, "Mixed_4f": 832, "Mixed_5b": 832,
               "Mixed_5c": 1024}
    fc = {}
    for i, ep in enumerate(endpoints):
        if ep == "Logits":
            continue
        fc[ep] = {"w": (jax.random.normal(keys[13 + i], (2 * ep_dict[ep], num_classes),
                                          jnp.float32) * 0.01).astype(jnp.bfloat16),
                  "scale": jnp.ones((num_classes,), jnp.float32),
                  "b": jnp.zeros((num_classes,), jnp.float32)}
    return {"i3d": i3d, "fc": fc}


# ------------------------------------------------------------------------------- main
if __name__ == "__main__":
    num_classes = 16
    endpoints = ("Mixed_4f", "Mixed_5c")
    # SMALL shapes consistent with the module: spatial /32 and temporal /8 stay >= 1.
    B, T, H, W, J = 1, 8, 32, 32, 4
    key = jax.random.PRNGKey(0)
    kp, kf, kpos = jax.random.split(key, 3)
    params = init_params(kp, num_classes, in_channels=3, endpoints=endpoints)
    frames = jax.random.normal(kf, (B, 3, T, H, W), jnp.float32)
    poses = jax.random.uniform(kpos, (B, T, J, 2), jnp.float32, 0.0, float(W))

    out = layers_pose_local_i3d_forward(params,
                                        {"frames": frames, "poses": poses},
                                        endpoints, num_classes)
    out = jax.block_until_ready(out)
    assert out.shape == (B, num_classes, 7), out.shape
    assert bool(jnp.all(jnp.isfinite(out)))
    print("KERNEL_OK")
</pallas_src>

<mosaic_0001>
module attributes {stable_mosaic.version = 11 : i64} {
  func.func @_matmul_kernel(%arg0: i32, %arg1: i32, %arg2: i32, %arg3: memref<512x384xbf16, #tpu.memory_space<vmem>>, %arg4: memref<384x128xbf16, #tpu.memory_space<vmem>>, %arg5: memref<1x128xf32, #tpu.memory_space<vmem>>, %arg6: memref<1x128xf32, #tpu.memory_space<vmem>>, %arg7: memref<512x128xbf16, #tpu.memory_space<vmem>>, %arg8: memref<512x128xf32, #tpu.memory_space<vmem>>) attributes {dimension_semantics = [#tpu.dimension_semantics<parallel>, #tpu.dimension_semantics<parallel>, #tpu.dimension_semantics<arbitrary>], iteration_bounds = array<i64: 2, 1, 3>, scalar_prefetch = 0 : i64, scratch_operands = 1 : i64, tpu.core_type = #tpu.core_type<tc>, window_params = [{transform_indices = @transform_0, window_bounds = array<i64: 512, 384>}, {transform_indices = @transform_1, window_bounds = array<i64: 384, 128>}, {transform_indices = @transform_2, window_bounds = array<i64: 1, 128>}, {transform_indices = @transform_3, window_bounds = array<i64: 1, 128>}, {transform_indices = @transform_4, window_bounds = array<i64: 512, 128>}]} {
    %c0_i32 = arith.constant 0 : i32
    %0 = arith.cmpi eq, %arg2, %c0_i32 : i32
    %1 = arith.extui %0 : i1 to i32
    %c0_i32_0 = arith.constant 0 : i32
    %2 = arith.cmpi ne, %1, %c0_i32_0 : i32
    scf.if %2 {
      %cst_9 = arith.constant 0.000000e+00 : f32
      %12 = vector.broadcast %cst_9 : f32 to vector<512x128xf32>
      %c0_10 = arith.constant 0 : index
      %c0_11 = arith.constant 0 : index
      %13 = vector.load %arg8[%c0_10, %c0_11] : memref<512x128xf32, #tpu.memory_space<vmem>>, vector<512x128xf32>
      tpu.vector_store %arg8[%c0_10, %c0_11], %12 {strides = array<i32>} : memref<512x128xf32, #tpu.memory_space<vmem>>, vector<512x128xf32>,
    } else {
    }
    %c0 = arith.constant 0 : index
    %c0_1 = arith.constant 0 : index
    %3 = vector.load %arg8[%c0, %c0_1] : memref<512x128xf32, #tpu.memory_space<vmem>>, vector<512x128xf32>
    %c0_2 = arith.constant 0 : index
    %c0_3 = arith.constant 0 : index
    %4 = vector.load %arg3[%c0_2, %c0_3] : memref<512x384xbf16, #tpu.memory_space<vmem>>, vector<512x384xbf16>
    %c0_4 = arith.constant 0 : index
    %c0_5 = arith.constant 0 : index
    %5 = vector.load %arg4[%c0_4, %c0_5] : memref<384x128xbf16, #tpu.memory_space<vmem>>, vector<384x128xbf16>
    %cst = arith.constant dense<0.000000e+00> : vector<512x128xf32>
    %6 = tpu.matmul %4, %5, %cst {dimension_numbers = #tpu.dot_dimension_numbers<[1], [0], [0], [1], [0, 0, 1, 1], [], []>} : vector<512x384xbf16>, vector<384x128xbf16>, vector<512x128xf32> -> vector<512x128xf32>
    %7 = arith.addf %3, %6 : vector<512x128xf32>
    %c0_6 = arith.constant 0 : index
    %c0_7 = arith.constant 0 : index
    %8 = vector.load %arg8[%c0_6, %c0_7] : memref<512x128xf32, #tpu.memory_space<vmem>>, vector<512x128xf32>
    tpu.vector_store %arg8[%c0_6, %c0_7], %7 {strides = array<i32>} : memref<512x128xf32, #tpu.memory_space<vmem>>, vector<512x128xf32>,
    %c2_i32 = arith.constant 2 : i32
    %9 = arith.cmpi eq, %arg2, %c2_i32 : i32
    %10 = arith.extui %9 : i1 to i32
    %c0_i32_8 = arith.constant 0 : i32
    %11 = arith.cmpi ne, %10, %c0_i32_8 : i32
    scf.if %11 {
      %c0_9 = arith.constant 0 : index
      %c0_10 = arith.constant 0 : index
      %12 = vector.load %arg8[%c0_9, %c0_10] : memref<512x128xf32, #tpu.memory_space<vmem>>, vector<512x128xf32>
      %c0_11 = arith.constant 0 : index
      %c0_12 = arith.constant 0 : index
      %13 = vector.load %arg5[%c0_11, %c0_12] : memref<1x128xf32, #tpu.memory_space<vmem>>, vector<1x128xf32>
      %14 = vector.broadcast %13 : vector<1x128xf32> to vector<512x128xf32>
      %15 = arith.mulf %12, %14 : vector<512x128xf32>
      %c0_13 = arith.constant 0 : index
      %c0_14 = arith.constant 0 : index
      %16 = vector.load %arg6[%c0_13, %c0_14] : memref<1x128xf32, #tpu.memory_space<vmem>>, vector<1x128xf32>
      %17 = vector.broadcast %16 : vector<1x128xf32> to vector<512x128xf32>
      %18 = arith.addf %15, %17 : vector<512x128xf32>
      %cst_15 = arith.constant 0.000000e+00 : f32
      %19 = vector.broadcast %cst_15 : f32 to vector<512x128xf32>
      %20 = arith.maximumf %18, %19 : vector<512x128xf32>
      %21 = arith.truncf %20 : vector<512x128xf32> to vector<512x128xbf16>
      %c0_16 = arith.constant 0 : index
      %c0_17 = arith.constant 0 : index
      %22 = vector.load %arg7[%c0_16, %c0_17] : memref<512x128xbf16, #tpu.memory_space<vmem>>, vector<512x128xbf16>
      tpu.vector_store %arg7[%c0_16, %c0_17], %21 {strides = array<i32>} : memref<512x128xbf16, #tpu.memory_space<vmem>>, vector<512x128xbf16>,
    } else {
    }
    return
  }
  func.func @transform_0(%arg0: i32, %arg1: i32, %arg2: i32) -> (i32, i32) {
    %c0_i32 = arith.constant 0 : i32
    return %arg0, %arg2 : i32, i32
  }
  func.func @transform_1(%arg0: i32, %arg1: i32, %arg2: i32) -> (i32, i32) {
    %c0_i32 = arith.constant 0 : i32
    return %arg2, %arg1 : i32, i32
  }
  func.func @transform_2(%arg0: i32, %arg1: i32, %arg2: i32) -> (i32, i32) {
    %c0_i32 = arith.constant 0 : i32
    %c0_i32_0 = arith.constant 0 : i32
    return %c0_i32, %arg1 : i32, i32
  }
  func.func @transform_3(%arg0: i32, %arg1: i32, %arg2: i32) -> (i32, i32) {
    %c0_i32 = arith.constant 0 : i32
    %c0_i32_0 = arith.constant 0 : i32
    return %c0_i32, %arg1 : i32, i32
  }
  func.func @transform_4(%arg0: i32, %arg1: i32, %arg2: i32) -> (i32, i32) {
    %c0_i32 = arith.constant 0 : i32
    return %arg0, %arg1 : i32, i32
  }
}

</mosaic_0001>

<bundles_post_ra>
// kernel: matmul_scale_shift.1
= control target key start
LH: loop header
LB: loop body
LE: loop exit
PB: predicated region body
PF: predicated region fallthrough
CT: control target
= control target key end

     0   :  { %s4010_s15 = smov 0   ;;  %s4012_s16 = smov 0   ;;  %s4885_s0 = inlined_call_operand.vmem [shape: bf16[1024,1152], index: 0, kind: input, shape index: {}]   ;;  %s4886_s1 = inlined_call_operand.vmem [shape: bf16[1152,128], index: 1, kind: input, shape index: {}]   ;;  %s4887_s2 = inlined_call_operand.vmem [shape: f32[1,128], index: 2, kind: input, shape index: {}]   ;;  %s4888_s3 = inlined_call_operand.vmem [shape: f32[1,128], index: 3, kind: input, shape index: {}]   ;;  %s4889_s4 = inlined_call_operand.vmem [shape: bf16[1024,128], index: 4, kind: output, shape index: {}]  }
   0x1   :  { %s4014_s17 = smov 0   ;;  %s4016_s18 = smov 0  }
   0x2   :  { %s4018_s19 = smov 0   ;;  %s4020_s20 = smov 0  }
   0x3   :  { %s4022_s21 = smov 0  }
   0x4 LB: > { %s26_s22 = sadd.s32 1, %s3973_s19  ;;  %s33_s23 = sadd.s32 1, %s3977_s20  ;;  %s3981_s21 = sphi %s4022_s21, %s14_s21   ;;  %s3977_s20 = sphi %s4020_s20, %s4895_s20   ;;  %s3973_s19 = sphi %s4018_s19, %s4894_s19   ;;  %s3969_s18 = sphi %s4016_s18, %s4893_s18   ;;  %s3965_s17 = sphi %s4014_s17, %s4892_s17   ;;  %s3961_s16 = sphi %s4012_s16, %s4891_s16   ;;  %s3957_s15 = sphi %s4010_s15, %s4890_s15  }
   0x5   : > { %p27_p0 = scmp.ge.s32.totalorder %s26_s22, 3  ;;  %p49_p1 = scmp.ne.s32.totalorder %s3961_s16, %s3957_s15 }
   0x6   : > { %p50_p2 = scmp.eq.s32.totalorder %s3981_s21, 0  ;;  %s42_s27 = sadd.s32 1, %s3961_s16 }
   0x7   : > { %s4897_s22 = smov (%p27_p0, %s26_s22), 0  ;;  %s4899_s23 = smov (!%p27_p0, %s33_s23), %s3977_s20 }
   0x8   : > { %p51_p3 = por %p50_p2, %p49_p1  ;;  %p35_p4 = scmp.ge.s32.totalorder %s4899_s23, 2 }
   0x9   : > { %s38_s24 = ssub.s32 %s3973_s19, %s4897_s22  ;;  %p2981_p6 = scmp.ge.s32.totalorder %s3981_s21, 6 }
   0xa   : > { %s4901_s23 = smov (%p35_p4, %s4899_s23), 0 }
   0xb   : > { %s37_s25 = ssub.s32 %s3977_s20, %s4901_s23  ;;  %195 = sbr.rel (%p2981_p6) target bundleno = 99 (0x63), region = 24 }
   0xc   : > { %s39_s26 = sor.u32 %s38_s24, %s37_s25 }
   0xd   : > { %p40_p5 = scmp.eq.s32.totalorder %s39_s26, 0 }
   0xf   : > { %s4061_s28 = scalar_select %p40_p5, %s3961_s16, %s42_s27  }
  0x10   : > { %198 = sbr.rel (!%p51_p3) target bundleno = 99 (0x63), region = 28  ;;  %s200_s29 = sand.u32 (%p51_p3), 1, %s3961_s16  }
  0x11   : > { %s204_s30 = smul.u32 (%p51_p3), 3, %s3973_s19 }
  0x12   : > { %s3714_s5 = smul.u32 (%p51_p3), 768, %s200_s29 }
  0x13   : > { %s3715_s6 = smul.u32 (%p51_p3), 576, %s3977_s20 }
  0x14   : > { %s4075_s12 = scalar_lea.vmem (%p51_p3), [#allocation3], %s3714_s5 }
  0x15   : > { %s206_s7 = sadd.s32 %s3715_s6, %s204_s30 }
  0x16   : > { %s2984_s8 = sshll.u32 %s206_s7, 2 }
  0x17   : > { %s4070_s11 = scalar_lea.vmem %s4885_s0, %s2984_s8 }
  0x18   : > { %v223_v0 = vld [vmem:[%s4070_s11] sm:$0xff]  ;;  %v227_v2 = vld [vmem:[%s4070_s11 + $0x48] sm:$0xff]  ;;  %v231_v4 = vld [vmem:[%s4070_s11 + $0x90] sm:$0xff] }
  0x19   : > { %v225_v1 = vld [vmem:[%s4070_s11 + $0x24] sm:$0xff]  ;;  %224 = vst [vmem:[%s4075_s12] sm:$0xff] %v223_v0  ;;  %228 = vst [vmem:[%s4075_s12 + $0x18] sm:$0xff] %v227_v2  ;;  %v229_v3 = vld [vmem:[%s4070_s11 + $0x6c] sm:$0xff] }
  0x1a   : > { %226 = vst [vmem:[%s4075_s12 + $0xc] sm:$0xff] %v225_v1  ;;  %v233_v5 = vld [vmem:[%s4070_s11 + $0xb4] sm:$0xff]  ;;  %230 = vst [vmem:[%s4075_s12 + $0x24] sm:$0xff] %v229_v3  ;;  %v237_v7 = vld [vmem:[%s4070_s11 + $0xfc] sm:$0xff] }
  0x1b   : > { %232 = vst [vmem:[%s4075_s12 + $0x30] sm:$0xff] %v231_v4  ;;  %234 = vst [vmem:[%s4075_s12 + $0x3c] sm:$0xff] %v233_v5  ;;  %v235_v6 = vld [vmem:[%s4070_s11 + $0xd8] sm:$0xff]  ;;  %v239_v8 = vld [vmem:[%s4070_s11 + $0x120] sm:$0xff] }
  0x1c   : > { %236 = vst [vmem:[%s4075_s12 + $0x48] sm:$0xff] %v235_v6  ;;  %238 = vst [vmem:[%s4075_s12 + $0x54] sm:$0xff] %v237_v7  ;;  %v241_v9 = vld [vmem:[%s4070_s11 + $0x144] sm:$0xff]  ;;  %v245_v11 = vld [vmem:[%s4070_s11 + $0x18c] sm:$0xff] }
  0x1d   : > { %240 = vst [vmem:[%s4075_s12 + $0x60] sm:$0xff] %v239_v8  ;;  %v243_v10 = vld [vmem:[%s4070_s11 + $0x168] sm:$0xff]  ;;  %242 = vst [vmem:[%s4075_s12 + $0x6c] sm:$0xff] %v241_v9  ;;  %v247_v12 = vld [vmem:[%s4070_s11 + $0x1b0] sm:$0xff] }
  0x1e   : > { %244 = vst [vmem:[%s4075_s12 + $0x78] sm:$0xff] %v243_v10  ;;  %246 = vst [vmem:[%s4075_s12 + $0x84] sm:$0xff] %v245_v11  ;;  %v249_v13 = vld [vmem:[%s4070_s11 + $0x1d4] sm:$0xff]  ;;  %v253_v15 = vld [vmem:[%s4070_s11 + $0x21c] sm:$0xff] }
  0x1f   : > { %v251_v14 = vld [vmem:[%s4070_s11 + $0x1f8] sm:$0xff]  ;;  %248 = vst [vmem:[%s4075_s12 + $0x90] sm:$0xff] %v247_v12  ;;  %250 = vst [vmem:[%s4075_s12 + $0x9c] sm:$0xff] %v249_v13  ;;  %v255_v16 = vld [vmem:[%s4070_s11 + $0x240] sm:$0xff] }
  0x20   : > { %252 = vst [vmem:[%s4075_s12 + $0xa8] sm:$0xff] %v251_v14  ;;  %v257_v17 = vld [vmem:[%s4070_s11 + $0x264] sm:$0xff]  ;;  %254 = vst [vmem:[%s4075_s12 + $0xb4] sm:$0xff] %v253_v15  ;;  %v261_v19 = vld [vmem:[%s4070_s11 + $0x2ac] sm:$0xff] }
  0x21   : > { %256 = vst [vmem:[%s4075_s12 + $0xc0] sm:$0xff] %v255_v16  ;;  %258 = vst [vmem:[%s4075_s12 + $0xcc] sm:$0xff] %v257_v17  ;;  %v259_v18 = vld [vmem:[%s4070_s11 + $0x288] sm:$0xff]  ;;  %v263_v20 = vld [vmem:[%s4070_s11 + $0x2d0] sm:$0xff] }
  0x22   : > { %260 = vst [vmem:[%s4075_s12 + $0xd8] sm:$0xff] %v259_v18  ;;  %262 = vst [vmem:[%s4075_s12 + $0xe4] sm:$0xff] %v261_v19  ;;  %v265_v21 = vld [vmem:[%s4070_s11 + $0x2f4] sm:$0xff]  ;;  %v269_v23 = vld [vmem:[%s4070_s11 + $0x33c] sm:$0xff] }
  0x23   : > { %264 = vst [vmem:[%s4075_s12 + $0xf0] sm:$0xff] %v263_v20  ;;  %v267_v22 = vld [vmem:[%s4070_s11 + $0x318] sm:$0xff]  ;;  %266 = vst [vmem:[%s4075_s12 + $0xfc] sm:$0xff] %v265_v21  ;;  %v271_v24 = vld [vmem:[%s4070_s11 + $0x360] sm:$0xff] }
  0x24   : > { %268 = vst [vmem:[%s4075_s12 + $0x108] sm:$0xff] %v267_v22  ;;  %270 = vst [vmem:[%s4075_s12 + $0x114] sm:$0xff] %v269_v23  ;;  %v273_v25 = vld [vmem:[%s4070_s11 + $0x384] sm:$0xff]  ;;  %v277_v27 = vld [vmem:[%s4070_s11 + $0x3cc] sm:$0xff] }
  0x25   : > { %v275_v26 = vld [vmem:[%s4070_s11 + $0x3a8] sm:$0xff]  ;;  %272 = vst [vmem:[%s4075_s12 + $0x120] sm:$0xff] %v271_v24  ;;  %274 = vst [vmem:[%s4075_s12 + $0x12c] sm:$0xff] %v273_v25  ;;  %v279_v28 = vld [vmem:[%s4070_s11 + $0x3f0] sm:$0xff] }
  0x26   : > { %276 = vst [vmem:[%s4075_s12 + $0x138] sm:$0xff] %v275_v26  ;;  %v281_v29 = vld [vmem:[%s4070_s11 + $0x414] sm:$0xff]  ;;  %278 = vst [vmem:[%s4075_s12 + $0x144] sm:$0xff] %v277_v27  ;;  %v285_v31 = vld [vmem:[%s4070_s11 + $0x45c] sm:$0xff] }
  0x27   : > { %280 = vst [vmem:[%s4075_s12 + $0x150] sm:$0xff] %v279_v28  ;;  %282 = vst [vmem:[%s4075_s12 + $0x15c] sm:$0xff] %v281_v29  ;;  %v283_v30 = vld [vmem:[%s4070_s11 + $0x438] sm:$0xff]  ;;  %v287_v32 = vld [vmem:[%s4070_s11 + $0x480] sm:$0xff] }
  0x28   : > { %284 = vst [vmem:[%s4075_s12 + $0x168] sm:$0xff] %v283_v30  ;;  %286 = vst [vmem:[%s4075_s12 + $0x174] sm:$0xff] %v285_v31  ;;  %v289_v33 = vld [vmem:[%s4070_s11 + $0x4a4] sm:$0xff]  ;;  %v293_v35 = vld [vmem:[%s4070_s11 + $0x4ec] sm:$0xff] }
  0x29   : > { %288 = vst [vmem:[%s4075_s12 + $0x180] sm:$0xff] %v287_v32  ;;  %v291_v34 = vld [vmem:[%s4070_s11 + $0x4c8] sm:$0xff]  ;;  %290 = vst [vmem:[%s4075_s12 + $0x18c] sm:$0xff] %v289_v33  ;;  %v295_v36 = vld [vmem:[%s4070_s11 + $0x510] sm:$0xff] }
  0x2a   : > { %292 = vst [vmem:[%s4075_s12 + $0x198] sm:$0xff] %v291_v34  ;;  %294 = vst [vmem:[%s4075_s12 + $0x1a4] sm:$0xff] %v293_v35  ;;  %v297_v37 = vld [vmem:[%s4070_s11 + $0x534] sm:$0xff]  ;;  %v301_v39 = vld [vmem:[%s4070_s11 + $0x57c] sm:$0xff] }
  0x2b   : > { %v299_v38 = vld [vmem:[%s4070_s11 + $0x558] sm:$0xff]  ;;  %296 = vst [vmem:[%s4075_s12 + $0x1b0] sm:$0xff] %v295_v36  ;;  %298 = vst [vmem:[%s4075_s12 + $0x1bc] sm:$0xff] %v297_v37  ;;  %v303_v40 = vld [vmem:[%s4070_s11 + $0x5a0] sm:$0xff] }
  0x2c   : > { %300 = vst [vmem:[%s4075_s12 + $0x1c8] sm:$0xff] %v299_v38  ;;  %v305_v41 = vld [vmem:[%s4070_s11 + $0x5c4] sm:$0xff]  ;;  %302 = vst [vmem:[%s4075_s12 + $0x1d4] sm:$0xff] %v301_v39  ;;  %v309_v43 = vld [vmem:[%s4070_s11 + $0x60c] sm:$0xff] }
  0x2d   : > { %304 = vst [vmem:[%s4075_s12 + $0x1e0] sm:$0xff] %v303_v40  ;;  %306 = vst [vmem:[%s4075_s12 + $0x1ec] sm:$0xff] %v305_v41  ;;  %v307_v42 = vld [vmem:[%s4070_s11 + $0x5e8] sm:$0xff]  ;;  %v311_v44 = vld [vmem:[%s4070_s11 + $0x630] sm:$0xff] }
  0x2e   : > { %308 = vst [vmem:[%s4075_s12 + $0x1f8] sm:$0xff] %v307_v42  ;;  %310 = vst [vmem:[%s4075_s12 + $0x204] sm:$0xff] %v309_v43  ;;  %v313_v45 = vld [vmem:[%s4070_s11 + $0x654] sm:$0xff]  ;;  %v317_v47 = vld [vmem:[%s4070_s11 + $0x69c] sm:$0xff] }
  0x2f   : > { %312 = vst [vmem:[%s4075_s12 + $0x210] sm:$0xff] %v311_v44  ;;  %v315_v46 = vld [vmem:[%s4070_s11 + $0x678] sm:$0xff]  ;;  %314 = vst [vmem:[%s4075_s12 + $0x21c] sm:$0xff] %v313_v45  ;;  %v319_v48 = vld [vmem:[%s4070_s11 + $0x6c0] sm:$0xff] }
  0x30   : > { %316 = vst [vmem:[%s4075_s12 + $0x228] sm:$0xff] %v315_v46  ;;  %318 = vst [vmem:[%s4075_s12 + $0x234] sm:$0xff] %v317_v47  ;;  %v321_v49 = vld [vmem:[%s4070_s11 + $0x6e4] sm:$0xff]  ;;  %v325_v51 = vld [vmem:[%s4070_s11 + $0x72c] sm:$0xff] }
  0x31   : > { %v323_v50 = vld [vmem:[%s4070_s11 + $0x708] sm:$0xff]  ;;  %320 = vst [vmem:[%s4075_s12 + $0x240] sm:$0xff] %v319_v48  ;;  %322 = vst [vmem:[%s4075_s12 + $0x24c] sm:$0xff] %v321_v49  ;;  %v327_v52 = vld [vmem:[%s4070_s11 + $0x750] sm:$0xff] }
  0x32   : > { %324 = vst [vmem:[%s4075_s12 + $0x258] sm:$0xff] %v323_v50  ;;  %v329_v53 = vld [vmem:[%s4070_s11 + $0x774] sm:$0xff]  ;;  %326 = vst [vmem:[%s4075_s12 + $0x264] sm:$0xff] %v325_v51  ;;  %v333_v55 = vld [vmem:[%s4070_s11 + $0x7bc] sm:$0xff] }
  0x33   : > { %328 = vst [vmem:[%s4075_s12 + $0x270] sm:$0xff] %v327_v52  ;;  %330 = vst [vmem:[%s4075_s12 + $0x27c] sm:$0xff] %v329_v53  ;;  %v331_v54 = vld [vmem:[%s4070_s11 + $0x798] sm:$0xff]  ;;  %v335_v56 = vld [vmem:[%s4070_s11 + $0x7e0] sm:$0xff] }
  0x34   : > { %332 = vst [vmem:[%s4075_s12 + $0x288] sm:$0xff] %v331_v54  ;;  %334 = vst [vmem:[%s4075_s12 + $0x294] sm:$0xff] %v333_v55  ;;  %v337_v57 = vld [vmem:[%s4070_s11 + $0x804] sm:$0xff]  ;;  %v341_v59 = vld [vmem:[%s4070_s11 + $0x84c] sm:$0xff] }
  0x35   : > { %336 = vst [vmem:[%s4075_s12 + $0x2a0] sm:$0xff] %v335_v56  ;;  %v339_v58 = vld [vmem:[%s4070_s11 + $0x828] sm:$0xff]  ;;  %338 = vst [vmem:[%s4075_s12 + $0x2ac] sm:$0xff] %v337_v57  ;;  %v343_v60 = vld [vmem:[%s4070_s11 + $0x870] sm:$0xff] }
  0x36   : > { %340 = vst [vmem:[%s4075_s12 + $0x2b8] sm:$0xff] %v339_v58  ;;  %342 = vst [vmem:[%s4075_s12 + $0x2c4] sm:$0xff] %v341_v59  ;;  %v345_v61 = vld [vmem:[%s4070_s11 + $0x894] sm:$0xff]  ;;  %v349_v63 = vld [vmem:[%s4070_s11 + $0x8dc] sm:$0xff] }
  0x37   : > { %v347_v62 = vld [vmem:[%s4070_s11 + $0x8b8] sm:$0xff]  ;;  %344 = vst [vmem:[%s4075_s12 + $0x2d0] sm:$0xff] %v343_v60  ;;  %346 = vst [vmem:[%s4075_s12 + $0x2dc] sm:$0xff] %v345_v61  ;;  %v2985_v0 = vld [vmem:[%s4070_s11 + $0x8] sm:$0xf] }
  0x38   : > { %348 = vst [vmem:[%s4075_s12 + $0x2e8] sm:$0xff] %v347_v62  ;;  %v2987_v1 = vld [vmem:[%s4070_s11 + $0x2c] sm:$0xf]  ;;  %350 = vst [vmem:[%s4075_s12 + $0x2f4] sm:$0xff] %v349_v63  ;;  %v2989_v2 = vld [vmem:[%s4070_s11 + $0x50] sm:$0xf] }
  0x39   : > { %2986 = vst [vmem:[%s4075_s12 + $0x8] sm:$0xf] %v2985_v0  ;;  %2988 = vst [vmem:[%s4075_s12 + $0x14] sm:$0xf] %v2987_v1  ;;  %v2991_v3 = vld [vmem:[%s4070_s11 + $0x74] sm:$0xf] }
  0x3a   : > { %v2993_v4 = vld [vmem:[%s4070_s11 + $0x98] sm:$0xf]  ;;  %2990 = vst [vmem:[%s4075_s12 + $0x20] sm:$0xf] %v2989_v2  ;;  %2992 = vst [vmem:[%s4075_s12 + $0x2c] sm:$0xf] %v2991_v3 }
  0x3b   : > { %2994 = vst [vmem:[%s4075_s12 + $0x38] sm:$0xf] %v2993_v4  ;;  %v2995_v5 = vld [vmem:[%s4070_s11 + $0xbc] sm:$0xf]  ;;  %v2997_v6 = vld [vmem:[%s4070_s11 + $0xe0] sm:$0xf] }
  0x3c   : > { %v2999_v7 = vld [vmem:[%s4070_s11 + $0x104] sm:$0xf]  ;;  %2996 = vst [vmem:[%s4075_s12 + $0x44] sm:$0xf] %v2995_v5  ;;  %2998 = vst [vmem:[%s4075_s12 + $0x50] sm:$0xf] %v2997_v6 }
  0x3d   : > { %3000 = vst [vmem:[%s4075_s12 + $0x5c] sm:$0xf] %v2999_v7  ;;  %v3001_v8 = vld [vmem:[%s4070_s11 + $0x128] sm:$0xf]  ;;  %v3003_v9 = vld [vmem:[%s4070_s11 + $0x14c] sm:$0xf] }
  0x3e   : > { %v3005_v10 = vld [vmem:[%s4070_s11 + $0x170] sm:$0xf]  ;;  %3002 = vst [vmem:[%s4075_s12 + $0x68] sm:$0xf] %v3001_v8  ;;  %3004 = vst [vmem:[%s4075_s12 + $0x74] sm:$0xf] %v3003_v9 }
  0x3f   : > { %3006 = vst [vmem:[%s4075_s12 + $0x80] sm:$0xf] %v3005_v10  ;;  %v3007_v11 = vld [vmem:[%s4070_s11 + $0x194] sm:$0xf]  ;;  %v3009_v12 = vld [vmem:[%s4070_s11 + $0x1b8] sm:$0xf] }
  0x40   : > { %v3011_v13 = vld [vmem:[%s4070_s11 + $0x1dc] sm:$0xf]  ;;  %3008 = vst [vmem:[%s4075_s12 + $0x8c] sm:$0xf] %v3007_v11  ;;  %3010 = vst [vmem:[%s4075_s12 + $0x98] sm:$0xf] %v3009_v12 }
  0x41   : > { %3012 = vst [vmem:[%s4075_s12 + $0xa4] sm:$0xf] %v3011_v13  ;;  %v3013_v14 = vld [vmem:[%s4070_s11 + $0x200] sm:$0xf]  ;;  %v3015_v15 = vld [vmem:[%s4070_s11 + $0x224] sm:$0xf] }
  0x42   : > { %v3017_v16 = vld [vmem:[%s4070_s11 + $0x248] sm:$0xf]  ;;  %3014 = vst [vmem:[%s4075_s12 + $0xb0] sm:$0xf] %v3013_v14  ;;  %3016 = vst [vmem:[%s4075_s12 + $0xbc] sm:$0xf] %v3015_v15 }
  0x43   : > { %3018 = vst [vmem:[%s4075_s12 + $0xc8] sm:$0xf] %v3017_v16  ;;  %v3019_v17 = vld [vmem:[%s4070_s11 + $0x26c] sm:$0xf]  ;;  %v3021_v18 = vld [vmem:[%s4070_s11 + $0x290] sm:$0xf] }
  0x44   : > { %v3023_v19 = vld [vmem:[%s4070_s11 + $0x2b4] sm:$0xf]  ;;  %3020 = vst [vmem:[%s4075_s12 + $0xd4] sm:$0xf] %v3019_v17  ;;  %3022 = vst [vmem:[%s4075_s12 + $0xe0] sm:$0xf] %v3021_v18 }
  0x45   : > { %3024 = vst [vmem:[%s4075_s12 + $0xec] sm:$0xf] %v3023_v19  ;;  %v3025_v20 = vld [vmem:[%s4070_s11 + $0x2d8] sm:$0xf]  ;;  %v3027_v21 = vld [vmem:[%s4070_s11 + $0x2fc] sm:$0xf] }
  0x46   : > { %v3029_v22 = vld [vmem:[%s4070_s11 + $0x320] sm:$0xf]  ;;  %3026 = vst [vmem:[%s4075_s12 + $0xf8] sm:$0xf] %v3025_v20  ;;  %3028 = vst [vmem:[%s4075_s12 + $0x104] sm:$0xf] %v3027_v21 }
  0x47   : > { %3030 = vst [vmem:[%s4075_s12 + $0x110] sm:$0xf] %v3029_v22  ;;  %v3031_v23 = vld [vmem:[%s4070_s11 + $0x344] sm:$0xf]  ;;  %v3033_v24 = vld [vmem:[%s4070_s11 + $0x368] sm:$0xf] }
  0x48   : > { %v3035_v25 = vld [vmem:[%s4070_s11 + $0x38c] sm:$0xf]  ;;  %3032 = vst [vmem:[%s4075_s12 + $0x11c] sm:$0xf] %v3031_v23  ;;  %3034 = vst [vmem:[%s4075_s12 + $0x128] sm:$0xf] %v3033_v24 }
  0x49   : > { %3036 = vst [vmem:[%s4075_s12 + $0x134] sm:$0xf] %v3035_v25  ;;  %v3037_v26 = vld [vmem:[%s4070_s11 + $0x3b0] sm:$0xf]  ;;  %v3039_v27 = vld [vmem:[%s4070_s11 + $0x3d4] sm:$0xf] }
  0x4a   : > { %v3041_v28 = vld [vmem:[%s4070_s11 + $0x3f8] sm:$0xf]  ;;  %3038 = vst [vmem:[%s4075_s12 + $0x140] sm:$0xf] %v3037_v26  ;;  %3040 = vst [vmem:[%s4075_s12 + $0x14c] sm:$0xf] %v3039_v27 }
  0x4b   : > { %3042 = vst [vmem:[%s4075_s12 + $0x158] sm:$0xf] %v3041_v28  ;;  %v3043_v29 = vld [vmem:[%s4070_s11 + $0x41c] sm:$0xf]  ;;  %v3045_v30 = vld [vmem:[%s4070_s11 + $0x440] sm:$0xf] }
  0x4c   : > { %v3047_v31 = vld [vmem:[%s4070_s11 + $0x464] sm:$0xf]  ;;  %3044 = vst [vmem:[%s4075_s12 + $0x164] sm:$0xf] %v3043_v29  ;;  %3046 = vst [vmem:[%s4075_s12 + $0x170] sm:$0xf] %v3045_v30 }
  0x4d   : > { %3048 = vst [vmem:[%s4075_s12 + $0x17c] sm:$0xf] %v3047_v31  ;;  %v3049_v32 = vld [vmem:[%s4070_s11 + $0x488] sm:$0xf]  ;;  %v3051_v33 = vld [vmem:[%s4070_s11 + $0x4ac] sm:$0xf] }
  0x4e   : > { %v3053_v34 = vld [vmem:[%s4070_s11 + $0x4d0] sm:$0xf]  ;;  %3050 = vst [vmem:[%s4075_s12 + $0x188] sm:$0xf] %v3049_v32  ;;  %3052 = vst [vmem:[%s4075_s12 + $0x194] sm:$0xf] %v3051_v33 }
  0x4f   : > { %3054 = vst [vmem:[%s4075_s12 + $0x1a0] sm:$0xf] %v3053_v34  ;;  %v3055_v35 = vld [vmem:[%s4070_s11 + $0x4f4] sm:$0xf]  ;;  %v3057_v36 = vld [vmem:[%s4070_s11 + $0x518] sm:$0xf] }
  0x50   : > { %v3059_v37 = vld [vmem:[%s4070_s11 + $0x53c] sm:$0xf]  ;;  %3056 = vst [vmem:[%s4075_s12 + $0x1ac] sm:$0xf] %v3055_v35  ;;  %3058 = vst [vmem:[%s4075_s12 + $0x1b8] sm:$0xf] %v3057_v36 }
  0x51   : > { %3060 = vst [vmem:[%s4075_s12 + $0x1c4] sm:$0xf] %v3059_v37  ;;  %v3061_v38 = vld [vmem:[%s4070_s11 + $0x560] sm:$0xf]  ;;  %v3063_v39 = vld [vmem:[%s4070_s11 + $0x584] sm:$0xf] }
  0x52   : > { %v3065_v40 = vld [vmem:[%s4070_s11 + $0x5a8] sm:$0xf]  ;;  %3062 = vst [vmem:[%s4075_s12 + $0x1d0] sm:$0xf] %v3061_v38  ;;  %3064 = vst [vmem:[%s4075_s12 + $0x1dc] sm:$0xf] %v3063_v39 }
  0x53   : > { %3066 = vst [vmem:[%s4075_s12 + $0x1e8] sm:$0xf] %v3065_v40  ;;  %v3067_v41 = vld [vmem:[%s4070_s11 + $0x5cc] sm:$0xf]  ;;  %v3069_v42 = vld [vmem:[%s4070_s11 + $0x5f0] sm:$0xf] }
  0x54   : > { %v3071_v43 = vld [vmem:[%s4070_s11 + $0x614] sm:$0xf]  ;;  %3068 = vst [vmem:[%s4075_s12 + $0x1f4] sm:$0xf] %v3067_v41  ;;  %3070 = vst [vmem:[%s4075_s12 + $0x200] sm:$0xf] %v3069_v42 }
  0x55   : > { %3072 = vst [vmem:[%s4075_s12 + $0x20c] sm:$0xf] %v3071_v43  ;;  %v3073_v44 = vld [vmem:[%s4070_s11 + $0x638] sm:$0xf]  ;;  %v3075_v45 = vld [vmem:[%s4070_s11 + $0x65c] sm:$0xf] }
  0x56   : > { %v3077_v46 = vld [vmem:[%s4070_s11 + $0x680] sm:$0xf]  ;;  %3074 = vst [vmem:[%s4075_s12 + $0x218] sm:$0xf] %v3073_v44  ;;  %3076 = vst [vmem:[%s4075_s12 + $0x224] sm:$0xf] %v3075_v45 }
  0x57   : > { %3078 = vst [vmem:[%s4075_s12 + $0x230] sm:$0xf] %v3077_v46  ;;  %v3079_v47 = vld [vmem:[%s4070_s11 + $0x6a4] sm:$0xf]  ;;  %v3081_v48 = vld [vmem:[%s4070_s11 + $0x6c8] sm:$0xf] }
  0x58   : > { %v3083_v49 = vld [vmem:[%s4070_s11 + $0x6ec] sm:$0xf]  ;;  %3080 = vst [vmem:[%s4075_s12 + $0x23c] sm:$0xf] %v3079_v47  ;;  %3082 = vst [vmem:[%s4075_s12 + $0x248] sm:$0xf] %v3081_v48 }
  0x59   : > { %3084 = vst [vmem:[%s4075_s12 + $0x254] sm:$0xf] %v3083_v49  ;;  %v3085_v50 = vld [vmem:[%s4070_s11 + $0x710] sm:$0xf]  ;;  %v3087_v51 = vld [vmem:[%s4070_s11 + $0x734] sm:$0xf] }
  0x5a   : > { %v3089_v52 = vld [vmem:[%s4070_s11 + $0x758] sm:$0xf]  ;;  %3086 = vst [vmem:[%s4075_s12 + $0x260] sm:$0xf] %v3085_v50  ;;  %3088 = vst [vmem:[%s4075_s12 + $0x26c] sm:$0xf] %v3087_v51 }
  0x5b   : > { %3090 = vst [vmem:[%s4075_s12 + $0x278] sm:$0xf] %v3089_v52  ;;  %v3091_v53 = vld [vmem:[%s4070_s11 + $0x77c] sm:$0xf]  ;;  %v3093_v54 = vld [vmem:[%s4070_s11 + $0x7a0] sm:$0xf] }
  0x5c   : > { %v3095_v55 = vld [vmem:[%s4070_s11 + $0x7c4] sm:$0xf]  ;;  %3092 = vst [vmem:[%s4075_s12 + $0x284] sm:$0xf] %v3091_v53  ;;  %3094 = vst [vmem:[%s4075_s12 + $0x290] sm:$0xf] %v3093_v54 }
  0x5d   : > { %3096 = vst [vmem:[%s4075_s12 + $0x29c] sm:$0xf] %v3095_v55  ;;  %v3097_v56 = vld [vmem:[%s4070_s11 + $0x7e8] sm:$0xf]  ;;  %v3099_v57 = vld [vmem:[%s4070_s11 + $0x80c] sm:$0xf] }
  0x5e   : > { %v3101_v58 = vld [vmem:[%s4070_s11 + $0x830] sm:$0xf]  ;;  %3098 = vst [vmem:[%s4075_s12 + $0x2a8] sm:$0xf] %v3097_v56  ;;  %3100 = vst [vmem:[%s4075_s12 + $0x2b4] sm:$0xf] %v3099_v57 }
  0x5f   : > { %3102 = vst [vmem:[%s4075_s12 + $0x2c0] sm:$0xf] %v3101_v58  ;;  %v3103_v59 = vld [vmem:[%s4070_s11 + $0x854] sm:$0xf]  ;;  %v3105_v60 = vld [vmem:[%s4070_s11 + $0x878] sm:$0xf] }
  0x60   : > { %v3107_v61 = vld [vmem:[%s4070_s11 + $0x89c] sm:$0xf]  ;;  %3104 = vst [vmem:[%s4075_s12 + $0x2cc] sm:$0xf] %v3103_v59  ;;  %3106 = vst [vmem:[%s4075_s12 + $0x2d8] sm:$0xf] %v3105_v60 }
  0x61   : > { %3108 = vst [vmem:[%s4075_s12 + $0x2e4] sm:$0xf] %v3107_v61  ;;  %v3109_v62 = vld [vmem:[%s4070_s11 + $0x8c0] sm:$0xf]  ;;  %v3111_v63 = vld [vmem:[%s4070_s11 + $0x8e4] sm:$0xf] }
  0x62   : > { %3110 = vst [vmem:[%s4075_s12 + $0x2f0] sm:$0xf] %v3109_v62  ;;  %3112 = vst [vmem:[%s4075_s12 + $0x2fc] sm:$0xf] %v3111_v63 }
  0x63 PF: > { %p3113_p7 = scmp.ge.s32.totalorder %s3981_s21, 1  ;;  %p503_p8 = scmp.lt.s32.totalorder %s3981_s21, 7 }
  0x65   : > { %p504_p9 = pnand %p3113_p7, %p503_p8 }
  0x66   : > { %s510_s13 = sand.u32 (!%p504_p9), 1, %s3957_s15   ;;  %s554_s14 = smul.u32 (!%p504_p9), 48, %s3965_s17 }
  0x67   : > { %507 = sbr.rel (%p504_p9) target bundleno = 665 (0x299), region = 58  ;;  %s3115_s25 = sshll.u32 (!%p504_p9), %s3969_s18, 6 }
  0x68   : > { %s3716_s24 = smul.u32 (!%p504_p9), 768, %s510_s13  ;;  %p555_p10 = scmp.lt.s32.totalorder (!%p504_p9), %s554_s14, 143 }
  0x69   : > { %p570_p11 = scmp.lt.s32.totalorder (!%p504_p9), %s3115_s25, 127  ;;  %p3117_p12 = scmp.ne.s32.totalorder (!%p504_p9), %s3965_s17, 0 }
  0x6a   : > { %s4345_s15 = scalar_lea.vmem (!%p504_p9), [#allocation3], %s3716_s24 }
  0x6c   : > { %s4903_s14 = smov (!%p555_p10, %s554_s14), 143  ;;  %s4905_s25 = smov (!%p570_p11, %s3115_s25), 127 }
  0x6d   : > { %s3114_s26 = sshll.u32 %s4903_s14, 2  ;;  %s3116_s5 = sshll.u32 %s4905_s25, 2 }
  0x6e   : > { %s4338_s30 = scalar_lea.vmem %s4886_s1, %s3114_s26  ;;  %s4343_s8 = scalar_lea.vmem %s4889_s4, %s3116_s5 }
  0x6f   : > { %582 = sbr.rel (%p3117_p12) target bundleno = 149 (0x95), region = 66 }
  0x74   : > { %v3983_v0 = vmov 0.0  }
  0x75   : > { %583 = vst [vmem:[#allocation2 + $0xb0] sm:$0xff] %v3983_v0  ;;  %584 = vst [vmem:[#allocation2 + $0x1b0] sm:$0xff] %v3983_v0 }
  0x76   : > { %585 = vst [vmem:[#allocation2 + $0xd8] sm:$0xff] %v3983_v0  ;;  %586 = vst [vmem:[#allocation2 + $0x18] sm:$0xff] %v3983_v0 }
  0x77   : > { %587 = vst [vmem:[#allocation2 + $0x50] sm:$0xff] %v3983_v0  ;;  %588 = vst [vmem:[#allocation2 + $0x168] sm:$0xff] %v3983_v0 }
  0x78   : > { %589 = vst [vmem:[#allocation2 + $0x130] sm:$0xff] %v3983_v0  ;;  %590 = vst [vmem:[#allocation2 + $0x48] sm:$0xff] %v3983_v0 }
  0x79   : > { %591 = vst [vmem:[#allocation2 + $0x180] sm:$0xff] %v3983_v0  ;;  %592 = vst [vmem:[#allocation2 + $0x110] sm:$0xff] %v3983_v0 }
  0x7a   : > { %593 = vst [vmem:[#allocation2 + $0x118] sm:$0xff] %v3983_v0  ;;  %594 = vst [vmem:[#allocation2 + $0x98] sm:$0xff] %v3983_v0 }
  0x7b   : > { %595 = vst [vmem:[#allocation2 + $0x120] sm:$0xff] %v3983_v0  ;;  %596 = vst [vmem:[#allocation2 + $0x150] sm:$0xff] %v3983_v0 }
  0x7c   : > { %597 = vst [vmem:[#allocation2 + $0x108] sm:$0xff] %v3983_v0  ;;  %598 = vst [vmem:[#allocation2 + $0x60] sm:$0xff] %v3983_v0 }
  0x7d   : > { %599 = vst [vmem:[#allocation2 + $0xe0] sm:$0xff] %v3983_v0  ;;  %600 = vst [vmem:[#allocation2 + $0x188] sm:$0xff] %v3983_v0 }
  0x7e   : > { %601 = vst [vmem:[#allocation2 + $0x138] sm:$0xff] %v3983_v0  ;;  %602 = vst [vmem:[#allocation2 + $0x140] sm:$0xff] %v3983_v0 }
  0x7f   : > { %603 = vst [vmem:[#allocation2 + $0x80] sm:$0xff] %v3983_v0  ;;  %604 = vst [vmem:[#allocation2 + $0x1a8] sm:$0xff] %v3983_v0 }
  0x80   : > { %605 = vst [vmem:[#allocation2 + $0x1b8] sm:$0xff] %v3983_v0  ;;  %606 = vst [vmem:[#allocation2 + $0x28] sm:$0xff] %v3983_v0 }
  0x81   : > { %607 = vst [vmem:[#allocation2 + $0x1e8] sm:$0xff] %v3983_v0  ;;  %608 = vst [vmem:[#allocation2 + $0xf8] sm:$0xff] %v3983_v0 }
  0x82   : > { %609 = vst [vmem:[#allocation2 + $0x160] sm:$0xff] %v3983_v0  ;;  %610 = vst [vmem:[#allocation2 + $0x30] sm:$0xff] %v3983_v0 }
  0x83   : > { %611 = vst [vmem:[#allocation2 + $0x1e0] sm:$0xff] %v3983_v0  ;;  %612 = vst [vmem:[#allocation2] sm:$0xff] %v3983_v0 }
  0x84   : > { %613 = vst [vmem:[#allocation2 + $0xf0] sm:$0xff] %v3983_v0  ;;  %614 = vst [vmem:[#allocation2 + $0x8] sm:$0xff] %v3983_v0 }
  0x85   : > { %615 = vst [vmem:[#allocation2 + $0x148] sm:$0xff] %v3983_v0  ;;  %616 = vst [vmem:[#allocation2 + $0x1d0] sm:$0xff] %v3983_v0 }
  0x86   : > { %617 = vst [vmem:[#allocation2 + $0x100] sm:$0xff] %v3983_v0  ;;  %618 = vst [vmem:[#allocation2 + $0xc8] sm:$0xff] %v3983_v0 }
  0x87   : > { %619 = vst [vmem:[#allocation2 + $0x40] sm:$0xff] %v3983_v0  ;;  %620 = vst [vmem:[#allocation2 + $0x1f8] sm:$0xff] %v3983_v0 }
  0x88   : > { %621 = vst [vmem:[#allocation2 + $0x20] sm:$0xff] %v3983_v0  ;;  %622 = vst [vmem:[#allocation2 + $0x128] sm:$0xff] %v3983_v0 }
  0x89   : > { %623 = vst [vmem:[#allocation2 + $0x1a0] sm:$0xff] %v3983_v0  ;;  %624 = vst [vmem:[#allocation2 + $0x1f0] sm:$0xff] %v3983_v0 }
  0x8a   : > { %625 = vst [vmem:[#allocation2 + $0xe8] sm:$0xff] %v3983_v0  ;;  %626 = vst [vmem:[#allocation2 + $0x78] sm:$0xff] %v3983_v0 }
  0x8b   : > { %627 = vst [vmem:[#allocation2 + $0x70] sm:$0xff] %v3983_v0  ;;  %628 = vst [vmem:[#allocation2 + $0x90] sm:$0xff] %v3983_v0 }
  0x8c   : > { %629 = vst [vmem:[#allocation2 + $0x1d8] sm:$0xff] %v3983_v0  ;;  %630 = vst [vmem:[#allocation2 + $0xd0] sm:$0xff] %v3983_v0 }
  0x8d   : > { %631 = vst [vmem:[#allocation2 + $0xb8] sm:$0xff] %v3983_v0  ;;  %632 = vst [vmem:[#allocation2 + $0x88] sm:$0xff] %v3983_v0 }
  0x8e   : > { %633 = vst [vmem:[#allocation2 + $0xa8] sm:$0xff] %v3983_v0  ;;  %634 = vst [vmem:[#allocation2 + $0x1c8] sm:$0xff] %v3983_v0 }
  0x8f   : > { %635 = vst [vmem:[#allocation2 + $0x170] sm:$0xff] %v3983_v0  ;;  %636 = vst [vmem:[#allocation2 + $0x178] sm:$0xff] %v3983_v0 }
  0x90   : > { %637 = vst [vmem:[#allocation2 + $0x68] sm:$0xff] %v3983_v0  ;;  %638 = vst [vmem:[#allocation2 + $0x190] sm:$0xff] %v3983_v0 }
  0x91   : > { %639 = vst [vmem:[#allocation2 + $0x198] sm:$0xff] %v3983_v0  ;;  %640 = vst [vmem:[#allocation2 + $0x38] sm:$0xff] %v3983_v0 }
  0x92   : > { %641 = vst [vmem:[#allocation2 + $0xc0] sm:$0xff] %v3983_v0  ;;  %642 = vst [vmem:[#allocation2 + $0x1c0] sm:$0xff] %v3983_v0 }
  0x93   : > { %643 = vst [vmem:[#allocation2 + $0x158] sm:$0xff] %v3983_v0  ;;  %644 = vst [vmem:[#allocation2 + $0x10] sm:$0xff] %v3983_v0 }
  0x94   : > { %645 = vst [vmem:[#allocation2 + $0x58] sm:$0xff] %v3983_v0  ;;  %646 = vst [vmem:[#allocation2 + $0xa0] sm:$0xff] %v3983_v0 }
  0x95 PF: > { %v3775_v1 = vld [vmem:[%s4338_s30 + $0x38] sm:$0xff]   ;;  %v3984_v2 = vmov 0   ;;  %v3776_v3 = vld [vmem:[%s4338_s30 + $0x30] sm:$0xff]   ;;  %v3777_v4 = vld [vmem:[%s4338_s30 + $0x28] sm:$0xff]   ;;  %p3238_p13 = scmp.ne.s32.totalorder %s3965_s17, 2 }
  0x96   : > { %1543 = vmatprep.subr.bf16.mxu0 %v3984_v2  ;;  %3682 = vmatprep.subr.bf16.mxu1 %v3984_v2  ;;  %v3778_v5 = vld [vmem:[%s4338_s30 + $0x20] sm:$0xff]   ;;  %v3779_v6 = vld [vmem:[%s4338_s30 + $0x18] sm:$0xff]   ;;  %v3780_v8 = vld [vmem:[%s4338_s30 + $0x10] sm:$0xff]  }
  0x97   : > { %1544 = vmatpush1.bf16.msra.mxu0 %v3775_v1  ;;  %3698 = vmatpush1.bf16.msra.mxu1 %v3775_v1  ;;  %v3793_v7 = vld [vmem:[%s4345_s15 + $0x4] ss:$12 sps:$4 sm:$0xff]   ;;  %v3781_v10 = vld [vmem:[%s4338_s30 + $0x8] sm:$0xff]   ;;  %v3783_v12 = vld [vmem:[%s4338_s30 + $0x78] sm:$0xff]  }
  0x98   : > { %1545 = vmatprep.subr.bf16.mxu0 %v3984_v2  ;;  %3683 = vmatprep.subr.bf16.mxu1 %v3984_v2  ;;  %v3796_v9 = vld [vmem:[%s4345_s15 + $0x244] ss:$12 sps:$4 sm:$0xff]   ;;  %v3785_v14 = vld [vmem:[%s4338_s30 + $0x68] sm:$0xff]   ;;  %v3787_v16 = vld [vmem:[%s4338_s30 + $0x58] sm:$0xff]  }
  0x99   : > { %1575 = vmatprep.mubr.bf16.mxu0 %v3793_v7  ;;  %1767 = vmatprep.mubr.bf16.mxu1 %v3796_v9  ;;  %v3782_v11 = vld [vmem:[%s4338_s30] sm:$0xff]   ;;  %v3784_v13 = vld [vmem:[%s4338_s30 + $0x70] sm:$0xff]   ;;  %v3789_v18 = vld [vmem:[%s4338_s30 + $0x48] sm:$0xff]  }
  0x9a   : > { %v3786_v15 = vld [vmem:[%s4338_s30 + $0x60] sm:$0xff]   ;;  %v3788_v17 = vld [vmem:[%s4338_s30 + $0x50] sm:$0xff]   ;;  %v3797_v20 = vld [vmem:[%s4338_s30 + $0xb8] sm:$0xff]  }
  0x9b   : > { %1546 = vmatpush1.bf16.msra.mxu0 %v3776_v3  ;;  %3699 = vmatpush1.bf16.msra.mxu1 %v3776_v3  ;;  %v3790_v19 = vld [vmem:[%s4338_s30 + $0x40] sm:$0xff]   ;;  %v3798_v23 = vld [vmem:[%s4345_s15 + $0x1c] ss:$12 sps:$4 sm:$0xff]   ;;  %v3804_v25 = vld [vmem:[%s4338_s30 + $0xb0] sm:$0xff]  }
  0x9c   : > { %1547 = vmatprep.subr.bf16.mxu0 %v3984_v2  ;;  %3684 = vmatprep.subr.bf16.mxu1 %v3984_v2  ;;  %v3791_v21 = vld [vmem:[%s4345_s15] ss:$12 sps:$4 sm:$0xff]   ;;  %v3800_v24 = vld [vmem:[%s4345_s15 + $0x25c] ss:$12 sps:$4 sm:$0xff]   ;;  %v3802_v27 = vld [vmem:[%s4345_s15 + $0x18] ss:$12 sps:$4 sm:$0xff]  }
  0x9d   : > { %v3794_v22 = vld [vmem:[%s4345_s15 + $0x240] ss:$12 sps:$4 sm:$0xff]   ;;  %v3803_v28 = vld [vmem:[%s4345_s15 + $0x258] ss:$12 sps:$4 sm:$0xff]   ;;  %v3809_v32 = vld [vmem:[%s4345_s15 + $0x30] ss:$12 sps:$4 sm:$0xff]  }
  0x9e   : > { %v3811_v26 = vld [vmem:[%s4338_s30 + $0xa8] sm:$0xff]   ;;  %v3805_v29 = vld [vmem:[%s4345_s15 + $0x34] ss:$12 sps:$4 sm:$0xff]   ;;  %v3825_v33 = vld [vmem:[%s4338_s30 + $0x98] sm:$0xff]  }
  0x9f   : > { %1548 = vmatpush1.bf16.msra.mxu0 %v3777_v4  ;;  %3700 = vmatpush1.bf16.msra.mxu1 %v3777_v4  ;;  %v3807_v30 = vld [vmem:[%s4345_s15 + $0x274] ss:$12 sps:$4 sm:$0xff]   ;;  %v3810_v34 = vld [vmem:[%s4345_s15 + $0x270] ss:$12 sps:$4 sm:$0xff]   ;;  %v3812_v35 = vld [vmem:[%s4345_s15 + $0x4c] ss:$12 sps:$4 sm:$0xff]  }
  0xa0   : > { %1549 = vmatprep.subr.bf16.mxu0 %v3984_v2  ;;  %3685 = vmatprep.subr.bf16.mxu1 %v3984_v2  ;;  %v3818_v31 = vld [vmem:[%s4338_s30 + $0xa0] sm:$0xff]   ;;  %v3814_v36 = vld [vmem:[%s4345_s15 + $0x28c] ss:$12 sps:$4 sm:$0xff]   ;;  %v3832_v37 = vld [vmem:[%s4338_s30 + $0x90] sm:$0xff]  }
  0xa1   : > { %v3816_v38 = vld [vmem:[%s4345_s15 + $0x48] ss:$12 sps:$4 sm:$0xff]   ;;  %v3819_v40 = vld [vmem:[%s4345_s15 + $0x64] ss:$12 sps:$4 sm:$0xff]   ;;  %v3823_v44 = vld [vmem:[%s4345_s15 + $0x60] ss:$12 sps:$4 sm:$0xff]  }
  0xa2   : > { %v3817_v39 = vld [vmem:[%s4345_s15 + $0x288] ss:$12 sps:$4 sm:$0xff]   ;;  %v3821_v41 = vld [vmem:[%s4345_s15 + $0x2a4] ss:$12 sps:$4 sm:$0xff]   ;;  %v3824_v45 = vld [vmem:[%s4345_s15 + $0x2a0] ss:$12 sps:$4 sm:$0xff]  }
  0xa3   : > { %1550 = vmatpush1.bf16.msra.mxu0 %v3778_v5  ;;  %3701 = vmatpush1.bf16.msra.mxu1 %v3778_v5  ;;  %v3839_v42 = vld [vmem:[%s4338_s30 + $0x88] sm:$0xff]   ;;  %v3846_v43 = vld [vmem:[%s4338_s30 + $0x80] sm:$0xff]   ;;  %v3837_v52 = vld [vmem:[%s4345_s15 + $0x90] ss:$12 sps:$4 sm:$0xff]  }
  0xa4   : > { %1551 = vmatprep.subr.bf16.mxu0 %v3984_v2  ;;  %3686 = vmatprep.subr.bf16.mxu1 %v3984_v2  ;;  %v3826_v46 = vld [vmem:[%s4345_s15 + $0x7c] ss:$12 sps:$4 sm:$0xff]   ;;  %v3830_v48 = vld [vmem:[%s4345_s15 + $0x78] ss:$12 sps:$4 sm:$0xff]   ;;  %v3833_v50 = vld [vmem:[%s4345_s15 + $0x94] ss:$12 sps:$4 sm:$0xff]  }
  0xa5   : > { %v3828_v47 = vld [vmem:[%s4345_s15 + $0x2bc] ss:$12 sps:$4 sm:$0xff]   ;;  %v3831_v49 = vld [vmem:[%s4345_s15 + $0x2b8] ss:$12 sps:$4 sm:$0xff]   ;;  %v3835_v51 = vld [vmem:[%s4345_s15 + $0x2d4] ss:$12 sps:$4 sm:$0xff]  }
  0xa6   : > { %v3838_v53 = vld [vmem:[%s4345_s15 + $0x2d0] ss:$12 sps:$4 sm:$0xff]   ;;  %v3840_v54 = vld [vmem:[%s4345_s15 + $0xac] ss:$12 sps:$4 sm:$0xff]   ;;  %v3844_v56 = vld [vmem:[%s4345_s15 + $0xa8] ss:$12 sps:$4 sm:$0xff]  }
  0xa7   : > { %1552 = vmatpush1.bf16.msra.mxu0 %v3779_v6  ;;  %3702 = vmatpush1.bf16.msra.mxu1 %v3779_v6  ;;  %v3842_v55 = vld [vmem:[%s4345_s15 + $0x2ec] ss:$12 sps:$4 sm:$0xff]   ;;  %v3845_v57 = vld [vmem:[%s4345_s15 + $0x2e8] ss:$12 sps:$4 sm:$0xff]   ;;  %v3847_v58 = vld [vmem:[%s4345_s15 + $0xc4] ss:$12 sps:$4 sm:$0xff]  }
  0xa8   : > { %1553 = vmatprep.subr.bf16.mxu0 %v3984_v2  ;;  %3687 = vmatprep.subr.bf16.mxu1 %v3984_v2  ;;  %v3849_v59 = vld [vmem:[%s4345_s15 + $0x8] ss:$12 sps:$4 sm:$0xff]   ;;  %v3850_v60 = vld [vmem:[%s4345_s15 + $0xc0] ss:$12 sps:$4 sm:$0xff]   ;;  %v3854_v63 = vld [vmem:[%s4345_s15 + $0x38] ss:$12 sps:$4 sm:$0xff]  }
  0xa9   : > { %v3851_v61 = vld [vmem:[%s4345_s15 + $0x20] ss:$12 sps:$4 sm:$0xff]   ;;  %v3852_v62 = vld [vmem:[%s4345_s15 + $0xdc] ss:$12 sps:$4 sm:$0xff]   ;;  %v3855_v0 = vld [vmem:[%s4345_s15 + $0xd8] ss:$12 sps:$4 sm:$0xff]  }
  0xaa   : > { %v3856_v1 = vld [vmem:[%s4345_s15 + $0x50] ss:$12 sps:$4 sm:$0xff]   ;;  %v3859_v3 = vld [vmem:[%s4345_s15 + $0x68] ss:$12 sps:$4 sm:$0xff]   ;;  %v3861_v5 = vld [vmem:[%s4345_s15 + $0x80] ss:$12 sps:$4 sm:$0xff]  }
  0xab   : > { %1554 = vmatpush1.bf16.msra.mxu0 %v3780_v8  ;;  %3703 = vmatpush1.bf16.msra.mxu1 %v3780_v8  ;;  %v3860_v4 = vld [vmem:[%s4345_s15 + $0xf0] ss:$12 sps:$4 sm:$0xff]   ;;  %v3862_v6 = vld [vmem:[%s4345_s15 + $0x10c] ss:$12 sps:$4 sm:$0xff]   ;;  %v3865_v8 = vld [vmem:[%s4345_s15 + $0x108] ss:$12 sps:$4 sm:$0xff]  }
  0xac   : > { %1555 = vmatprep.subr.bf16.mxu0 %v3984_v2  ;;  %3688 = vmatprep.subr.bf16.mxu1 %v3984_v2  ;;  %v3864_v7 = vld [vmem:[%s4345_s15 + $0x98] ss:$12 sps:$4 sm:$0xff]   ;;  %v3866_v9 = vld [vmem:[%s4345_s15 + $0xb0] ss:$12 sps:$4 sm:$0xff]  }
  0xaf   : > { %1556 = vmatpush1.bf16.msra.mxu0 %v3781_v10  ;;  %3704 = vmatpush1.bf16.msra.mxu1 %v3781_v10  ;;  %v3867_v10 = vld [vmem:[%s4345_s15 + $0x124] ss:$12 sps:$4 sm:$0xff]  }
  0xb0   : > { %1557 = vmatprep.subr.bf16.mxu0 %v3984_v2  ;;  %3689 = vmatprep.subr.bf16.mxu1 %v3984_v2 }
  0xb3   : > { %1558 = vmatpush1.bf16.msra.mxu0 %v3782_v11  ;;  %3705 = vmatpush1.bf16.msra.mxu1 %v3782_v11  ;;  %v3869_v11 = vld [vmem:[%s4345_s15 + $0xc8] ss:$12 sps:$4 sm:$0xff]  }
  0xb4   : > { %1559 = vmatprep.subr.bf16.mxu0 %v3984_v2  ;;  %3690 = vmatprep.subr.bf16.mxu1 %v3984_v2 }
  0xb7   : > { %1560 = vmatpush2.bf16.msra.mxu0 %v3783_v12  ;;  %3706 = vmatpush2.bf16.msra.mxu1 %v3783_v12  ;;  %v3870_v12 = vld [vmem:[%s4345_s15 + $0x120] ss:$12 sps:$4 sm:$0xff]  }
  0xb8   : > { %1561 = vmatprep.subr.bf16.mxu0 %v3984_v2  ;;  %3691 = vmatprep.subr.bf16.mxu1 %v3984_v2 }
  0xbb   : > { %1562 = vmatpush2.bf16.msra.mxu0 %v3784_v13  ;;  %3707 = vmatpush2.bf16.msra.mxu1 %v3784_v13  ;;  %v3871_v13 = vld [vmem:[%s4345_s15 + $0xe0] ss:$12 sps:$4 sm:$0xff]  }
  0xbc   : > { %1563 = vmatprep.subr.bf16.mxu0 %v3984_v2  ;;  %3692 = vmatprep.subr.bf16.mxu1 %v3984_v2 }
  0xbf   : > { %1564 = vmatpush2.bf16.msra.mxu0 %v3785_v14  ;;  %3708 = vmatpush2.bf16.msra.mxu1 %v3785_v14  ;;  %v3872_v14 = vld [vmem:[%s4345_s15 + $0x13c] ss:$12 sps:$4 sm:$0xff]  }
  0xc0   : > { %1565 = vmatprep.subr.bf16.mxu0 %v3984_v2  ;;  %3693 = vmatprep.subr.bf16.mxu1 %v3984_v2 }
  0xc3   : > { %1566 = vmatpush2.bf16.msra.mxu0 %v3786_v15  ;;  %3709 = vmatpush2.bf16.msra.mxu1 %v3786_v15  ;;  %v3874_v15 = vld [vmem:[%s4345_s15 + $0xf8] ss:$12 sps:$4 sm:$0xff]  }
  0xc4   : > { %1567 = vmatprep.subr.bf16.mxu0 %v3984_v2  ;;  %3694 = vmatprep.subr.bf16.mxu1 %v3984_v2 }
  0xc7   : > { %1568 = vmatpush2.bf16.msra.mxu0 %v3787_v16  ;;  %3710 = vmatpush2.bf16.msra.mxu1 %v3787_v16  ;;  %v3875_v16 = vld [vmem:[%s4345_s15 + $0x138] ss:$12 sps:$4 sm:$0xff]  }
  0xc8   : > { %1569 = vmatprep.subr.bf16.mxu0 %v3984_v2  ;;  %3695 = vmatprep.subr.bf16.mxu1 %v3984_v2 }
  0xcb   : > { %1570 = vmatpush2.bf16.msra.mxu0 %v3788_v17  ;;  %3711 = vmatpush2.bf16.msra.mxu1 %v3788_v17  ;;  %v3876_v17 = vld [vmem:[%s4345_s15 + $0x110] ss:$12 sps:$4 sm:$0xff]  }
  0xcc   : > { %1571 = vmatprep.subr.bf16.mxu0 %v3984_v2  ;;  %3696 = vmatprep.subr.bf16.mxu1 %v3984_v2 }
  0xcf   : > { %1572 = vmatpush2.bf16.msra.mxu0 %v3789_v18  ;;  %3712 = vmatpush2.bf16.msra.mxu1 %v3789_v18  ;;  %v3877_v18 = vld [vmem:[%s4345_s15 + $0x154] ss:$12 sps:$4 sm:$0xff]  }
  0xd0   : > { %1573 = vmatprep.subr.bf16.mxu0 %v3984_v2  ;;  %3697 = vmatprep.subr.bf16.mxu1 %v3984_v2  ;;  %v3857_v2 = vld [vmem:[%s4345_s15 + $0xf4] ss:$12 sps:$4 sm:$0xff]  }
  0xd3   : > { %1574 = vmatpush2.bf16.msra.mxu0 %v3790_v19  ;;  %3713 = vmatpush2.bf16.msra.mxu1 %v3790_v19  ;;  %v3879_v19 = vld [vmem:[%s4345_s15 + $0x128] ss:$12 sps:$4 sm:$0xff]  }
  0xd4   : > { %3602 = vmatprep.subr.bf16.mxu1 %v3797_v20 }
  0xd6   : > { %1576 = vmatmul.mubr.bf16.vlgmr.msra.gmra.mxu0 %v3791_v21  ;;  %1768 = vmatmul.mubr.bf16.vlgmr.msra.gmra.mxu1 %v3794_v22  ;;  %v3881_v21 = vld [vmem:[%s4345_s15 + $0x140] ss:$12 sps:$4 sm:$0xff]  }
  0xd7   : > { %3603 = vmatpush3.bf16.msra.mxu1 %v3797_v20  ;;  %1583 = vmatprep.mubr.bf16.mxu0 %v3798_v23  ;;  %v3880_v20 = vld [vmem:[%s4345_s15 + $0x150] ss:$12 sps:$4 sm:$0xff]   ;;  %v3882_v22 = vld [vmem:[%s4345_s15 + $0x16c] ss:$12 sps:$4 sm:$0xff]  }
  0xd8   : > { %1775 = vmatprep.mubr.bf16.mxu1 %v3800_v24  ;;  %3604 = vmatprep.subr.bf16.mxu1 %v3804_v25  ;;  %v3884_v23 = vld [vmem:[%s4345_s15 + $0x158] ss:$12 sps:$4 sm:$0xff]   ;;  %v3885_v24 = vld [vmem:[%s4345_s15 + $0x168] ss:$12 sps:$4 sm:$0xff]  }
  0xdb   : > { %3605 = vmatpush3.bf16.msra.mxu1 %v3804_v25  ;;  %v3886_v25 = vld [vmem:[%s4345_s15 + $0x170] ss:$12 sps:$4 sm:$0xff]  }
  0xdc   : > { %3606 = vmatprep.subr.bf16.mxu1 %v3811_v26 }
  0xde   : > { %1584 = vmatmul.mubr.bf16.gmra.mxu0 %v3802_v27  ;;  %1776 = vmatmul.mubr.bf16.gmra.mxu1 %v3803_v28  ;;  %v3889_v27 = vld [vmem:[%s4345_s15 + $0x188] ss:$12 sps:$4 sm:$0xff]   ;;  %v3890_v28 = vld [vmem:[%s4345_s15 + $0x180] ss:$12 sps:$4 sm:$0xff]  }
  0xdf   : > { %1591 = vmatprep.mubr.bf16.mxu0 %v3805_v29  ;;  %1783 = vmatprep.mubr.bf16.mxu1 %v3807_v30  ;;  %v3891_v29 = vld [vmem:[%s4345_s15 + $0x1a0] ss:$12 sps:$4 sm:$0xff]   ;;  %v3892_v30 = vld [vmem:[%s4345_s15 + $0x19c] ss:$12 sps:$4 sm:$0xff]  }
  0xe0   : > { %3607 = vmatpush3.bf16.msra.mxu1 %v3811_v26  ;;  %v3887_v26 = vld [vmem:[%s4345_s15 + $0x184] ss:$12 sps:$4 sm:$0xff]  }
  0xe1   : > { %3608 = vmatprep.subr.bf16.mxu1 %v3818_v31 }
  0xe4   : > { %3609 = vmatpush3.bf16.msra.mxu1 %v3818_v31  ;;  %v3894_v31 = vld [vmem:[%s4345_s15 + $0x1b8] ss:$12 sps:$4 sm:$0xff]  }
  0xe5   : > { %3610 = vmatprep.subr.bf16.mxu1 %v3825_v33 }
  0xe6   : > { %1592 = vmatmul.mubr.bf16.gmra.mxu0 %v3809_v32  ;;  %1784 = vmatmul.mubr.bf16.gmra.mxu1 %v3810_v34  ;;  %v3895_v32 = vld [vmem:[%s4345_s15 + $0x198] ss:$12 sps:$4 sm:$0xff]   ;;  %v3897_v34 = vld [vmem:[%s4345_s15 + $0x1b4] ss:$12 sps:$4 sm:$0xff]  }
  0xe7   : > { %1599 = vmatprep.mubr.bf16.mxu0 %v3812_v35  ;;  %1791 = vmatprep.mubr.bf16.mxu1 %v3814_v36  ;;  %v3899_v35 = vld [vmem:[%s4345_s15 + $0x1e8] ss:$12 sps:$4 sm:$0xff]   ;;  %v3900_v36 = vld [vmem:[%s4345_s15 + $0x1b0] ss:$12 sps:$4 sm:$0xff]  }
  0xe8   : > { %3611 = vmatpush3.bf16.msra.mxu1 %v3825_v33  ;;  %v3896_v33 = vld [vmem:[%s4345_s15 + $0x1d0] ss:$12 sps:$4 sm:$0xff]  }
  0xe9   : > { %3612 = vmatprep.subr.bf16.mxu1 %v3832_v37 }
  0xec   : > { %3613 = vmatpush3.bf16.msra.mxu1 %v3832_v37  ;;  %v3901_v37 = vld [vmem:[%s4345_s15 + $0x200] ss:$12 sps:$4 sm:$0xff]  }
  0xed   : > { %3614 = vmatprep.subr.bf16.mxu1 %v3839_v42 }
  0xee   : > { %1600 = vmatmul.mubr.bf16.gmra.mxu0 %v3816_v38  ;;  %1792 = vmatmul.mubr.bf16.gmra.mxu1 %v3817_v39  ;;  %v3902_v38 = vld [vmem:[%s4345_s15 + $0x1cc] ss:$12 sps:$4 sm:$0xff]  }
  0xef   : > { %1607 = vmatprep.mubr.bf16.mxu0 %v3819_v40  ;;  %1799 = vmatprep.mubr.bf16.mxu1 %v3821_v41  ;;  %v3904_v39 = vld [vmem:[%s4345_s15 + $0x218] ss:$12 sps:$4 sm:$0xff]   ;;  %v3905_v40 = vld [vmem:[%s4345_s15 + $0x1c8] ss:$12 sps:$4 sm:$0xff]   ;;  %v3906_v41 = vld [vmem:[%s4345_s15 + $0x230] ss:$12 sps:$4 sm:$0xff]  }
  0xf0   : > { %3615 = vmatpush3.bf16.msra.mxu1 %v3839_v42  ;;  %v3907_v42 = vld [vmem:[%s4345_s15 + $0x1e4] ss:$12 sps:$4 sm:$0xff]  }
  0xf1   : > { %3616 = vmatprep.subr.bf16.mxu1 %v3846_v43 }
  0xf4   : > { %3617 = vmatpush3.bf16.msra.mxu1 %v3846_v43  ;;  %v3909_v43 = vld [vmem:[%s4345_s15 + $0x248] ss:$12 sps:$4 sm:$0xff]  }
  0xf6   : > { %1608 = vmatmul.mubr.bf16.gmra.mxu0 %v3823_v44  ;;  %1800 = vmatmul.mubr.bf16.gmra.mxu1 %v3824_v45  ;;  %v3910_v44 = vld [vmem:[%s4345_s15 + $0x1e0] ss:$12 sps:$4 sm:$0xff]  }
  0xf7   : > { %1615 = vmatprep.mubr.bf16.mxu0 %v3826_v46  ;;  %1807 = vmatprep.mubr.bf16.mxu1 %v3828_v47  ;;  %v3911_v45 = vld [vmem:[%s4345_s15 + $0x260] ss:$12 sps:$4 sm:$0xff]   ;;  %v3912_v46 = vld [vmem:[%s4345_s15 + $0x1fc] ss:$12 sps:$4 sm:$0xff]   ;;  %v3914_v47 = vld [vmem:[%s4345_s15 + $0x278] ss:$12 sps:$4 sm:$0xff]  }
  0xfe   : > { %1616 = vmatmul.mubr.bf16.gmra.mxu0 %v3830_v48  ;;  %1808 = vmatmul.mubr.bf16.gmra.mxu1 %v3831_v49  ;;  %v3915_v48 = vld [vmem:[%s4345_s15 + $0x1f8] ss:$12 sps:$4 sm:$0xff]   ;;  %v3916_v49 = vld [vmem:[%s4345_s15 + $0x290] ss:$12 sps:$4 sm:$0xff]  }
  0xff   : > { %1623 = vmatprep.mubr.bf16.mxu0 %v3833_v50  ;;  %1815 = vmatprep.mubr.bf16.mxu1 %v3835_v51  ;;  %v3917_v50 = vld [vmem:[%s4345_s15 + $0x214] ss:$12 sps:$4 sm:$0xff]  }
 0x100   : > { %v3919_v51 = vld [vmem:[%s4345_s15 + $0x2a8] ss:$12 sps:$4 sm:$0xff]  }
 0x106   : > { %1624 = vmatmul.mubr.bf16.gmra.mxu0 %v3837_v52  ;;  %1816 = vmatmul.mubr.bf16.gmra.mxu1 %v3838_v53  ;;  %v3920_v52 = vld [vmem:[%s4345_s15 + $0x210] ss:$12 sps:$4 sm:$0xff]   ;;  %v3921_v53 = vld [vmem:[%s4345_s15 + $0x2c0] ss:$12 sps:$4 sm:$0xff]  }
 0x107   : > { %1631 = vmatprep.mubr.bf16.mxu0 %v3840_v54  ;;  %1823 = vmatprep.mubr.bf16.mxu1 %v3842_v55  ;;  %v3922_v54 = vld [vmem:[%s4345_s15 + $0x22c] ss:$12 sps:$4 sm:$0xff]  }
 0x108   : > { %v3924_v55 = vld [vmem:[%s4345_s15 + $0x2d8] ss:$12 sps:$4 sm:$0xff]  }
 0x10e   : > { %1632 = vmatmul.mubr.bf16.gmra.mxu0 %v3844_v56  ;;  %1824 = vmatmul.mubr.bf16.gmra.mxu1 %v3845_v57  ;;  %v3925_v56 = vld [vmem:[%s4345_s15 + $0x228] ss:$12 sps:$4 sm:$0xff]   ;;  %v3926_v57 = vld [vmem:[%s4345_s15 + $0x2f0] ss:$12 sps:$4 sm:$0xff]  }
 0x10f   : > { %1639 = vmatprep.mubr.bf16.mxu0 %v3847_v58  ;;  %3618 = vmatprep.mubr.bf16.mxu1 %v3849_v59 }
 0x116   : > { %1640 = vmatmul.mubr.bf16.gmra.mxu0 %v3850_v60  ;;  %3619 = vmatmul.mubr.bf16.vlgmr.msra.gmra.mxu1 %v3851_v61 }
 0x117   : > { %1647 = vmatprep.mubr.bf16.mxu0 %v3852_v62  ;;  %3622 = vmatprep.mubr.bf16.mxu1 %v3854_v63 }
 0x11e   : > { %1648 = vmatmul.mubr.bf16.gmra.mxu0 %v3855_v0  ;;  %3623 = vmatmul.mubr.bf16.gmra.mxu1 %v3856_v1 }
 0x11f   : > { %1655 = vmatprep.mubr.bf16.mxu0 %v3857_v2  ;;  %3626 = vmatprep.mubr.bf16.mxu1 %v3859_v3 }
 0x126   : > { %1656 = vmatmul.mubr.bf16.gmra.mxu0 %v3860_v4  ;;  %3627 = vmatmul.mubr.bf16.gmra.mxu1 %v3861_v5 }
 0x127   : > { %1663 = vmatprep.mubr.bf16.mxu0 %v3862_v6  ;;  %3630 = vmatprep.mubr.bf16.mxu1 %v3864_v7 }
 0x12e   : > { %1664 = vmatmul.mubr.bf16.gmra.mxu0 %v3865_v8  ;;  %3631 = vmatmul.mubr.bf16.gmra.mxu1 %v3866_v9 }
 0x12f   : > { %1671 = vmatprep.mubr.bf16.mxu0 %v3867_v10  ;;  %3634 = vmatprep.mubr.bf16.mxu1 %v3869_v11 }
 0x136   : > { %1672 = vmatmul.mubr.bf16.gmra.mxu0 %v3870_v12  ;;  %3635 = vmatmul.mubr.bf16.gmra.mxu1 %v3871_v13 }
 0x137   : > { %1679 = vmatprep.mubr.bf16.mxu0 %v3872_v14  ;;  %3638 = vmatprep.mubr.bf16.mxu1 %v3874_v15 }
 0x13e   : > { %1680 = vmatmul.mubr.bf16.gmra.mxu0 %v3875_v16  ;;  %3639 = vmatmul.mubr.bf16.gmra.mxu1 %v3876_v17 }
 0x13f   : > { %1687 = vmatprep.mubr.bf16.mxu0 %v3877_v18  ;;  %3642 = vmatprep.mubr.bf16.mxu1 %v3879_v19 }
 0x146   : > { %1688 = vmatmul.mubr.bf16.gmra.mxu0 %v3880_v20  ;;  %3643 = vmatmul.mubr.bf16.gmra.mxu1 %v3881_v21 }
 0x147   : > { %1695 = vmatprep.mubr.bf16.mxu0 %v3882_v22  ;;  %3646 = vmatprep.mubr.bf16.mxu1 %v3884_v23 }
 0x14e   : > { %1696 = vmatmul.mubr.bf16.gmra.mxu0 %v3885_v24  ;;  %3647 = vmatmul.mubr.bf16.gmra.mxu1 %v3886_v25 }
 0x14f   : > { %1703 = vmatprep.mubr.bf16.mxu0 %v3887_v26  ;;  %3650 = vmatprep.mubr.bf16.mxu1 %v3889_v27 }
 0x156   : > { %1704 = vmatmul.mubr.bf16.gmra.mxu0 %v3890_v28  ;;  %3651 = vmatmul.mubr.bf16.gmra.mxu1 %v3891_v29 }
 0x157   : > { %1711 = vmatprep.mubr.bf16.mxu0 %v3892_v30  ;;  %3654 = vmatprep.mubr.bf16.mxu1 %v3894_v31 }
 0x15e   : > { %1712 = vmatmul.mubr.bf16.gmra.mxu0 %v3895_v32  ;;  %3655 = vmatmul.mubr.bf16.gmra.mxu1 %v3896_v33 }
 0x15f   : > { %1719 = vmatprep.mubr.bf16.mxu0 %v3897_v34  ;;  %3658 = vmatprep.mubr.bf16.mxu1 %v3899_v35 }
 0x166   : > { %1720 = vmatmul.mubr.bf16.gmra.mxu0 %v3900_v36  ;;  %3659 = vmatmul.mubr.bf16.gmra.mxu1 %v3901_v37 }
 0x167   : > { %1727 = vmatprep.mubr.bf16.mxu0 %v3902_v38  ;;  %3662 = vmatprep.mubr.bf16.mxu1 %v3904_v39 }
 0x16e   : > { %1728 = vmatmul.mubr.bf16.gmra.mxu0 %v3905_v40  ;;  %3663 = vmatmul.mubr.bf16.gmra.mxu1 %v3906_v41 }
 0x16f   : > { %1735 = vmatprep.mubr.bf16.mxu0 %v3907_v42  ;;  %3666 = vmatprep.mubr.bf16.mxu1 %v3909_v43 }
 0x176   : > { %1736 = vmatmul.mubr.bf16.gmra.mxu0 %v3910_v44  ;;  %3667 = vmatmul.mubr.bf16.gmra.mxu1 %v3911_v45 }
 0x177   : > { %1743 = vmatprep.mubr.bf16.mxu0 %v3912_v46  ;;  %3670 = vmatprep.mubr.bf16.mxu1 %v3914_v47 }
 0x17e   : > { %1744 = vmatmul.mubr.bf16.gmra.mxu0 %v3915_v48  ;;  %3671 = vmatmul.mubr.bf16.gmra.mxu1 %v3916_v49 }
 0x17f   : > { %1751 = vmatprep.mubr.bf16.mxu0 %v3917_v50  ;;  %3674 = vmatprep.mubr.bf16.mxu1 %v3919_v51 }
 0x186   : > { %1752 = vmatmul.mubr.bf16.gmra.mxu0 %v3920_v52  ;;  %3675 = vmatmul.mubr.bf16.gmra.mxu1 %v3921_v53 }
 0x187   : > { %1759 = vmatprep.mubr.bf16.mxu0 %v3922_v54  ;;  %3678 = vmatprep.mubr.bf16.mxu1 %v3924_v55 }
 0x18e   : > { %1760 = vmatmul.mubr.bf16.gmra.mxu0 %v3925_v56  ;;  %3679 = vmatmul.mubr.bf16.gmra.mxu1 %v3926_v57 }
 0x196   : > { %v4564_v58 = vpop.f32.mrf.mxu0  ;;  %v4566_v59 = vpop.f32.mrf.mxu1 }
 0x198   : > { %v1579_v60 = vpop.f32.mrf.mxu0  ;;  %v1771_v61 = vpop.f32.mrf.mxu1 }
 0x199   : > { %v649_v61 = vld [vmem:[#allocation2 + $0xd8] sm:$0xff] }
 0x19a   : > { %v4568_v62 = vpop.f32.mrf.mxu0  ;;  %v4570_v63 = vpop.f32.mrf.mxu1 }
 0x19c   : > { %v1582_v0 = vpop.f32.mrf.mxu0  ;;  %v1774_v1 = vpop.f32.mrf.mxu1 }
 0x19e   : > { %v1585_v2 = vpop.f32.mrf.mxu0  ;;  %v4572_v3 = vpop.f32.mrf.mxu1 }
 0x1a0   : > { %v1587_v4 = vpop.f32.mrf.mxu0  ;;  %v1779_v5 = vpop.f32.mrf.mxu1 }
 0x1a1   : > { %v647_v5 = vld [vmem:[#allocation2 + $0xb0] sm:$0xff] }
 0x1a2   : > { %v4574_v6 = vpop.f32.mrf.mxu0  ;;  %v4576_v7 = vpop.f32.mrf.mxu1 }
 0x1a4   : > { %v1590_v8 = vpop.f32.mrf.mxu0  ;;  %v1782_v9 = vpop.f32.mrf.mxu1 }
 0x1a6   : > { %v4578_v10 = vpop.f32.mrf.mxu0  ;;  %v4580_v11 = vpop.f32.mrf.mxu1 }
 0x1a8   : > { %v1595_v12 = vpop.f32.mrf.mxu0  ;;  %v1787_v13 = vpop.f32.mrf.mxu1 }
 0x1aa   : > { %v4582_v14 = vpop.f32.mrf.mxu0  ;;  %v4584_v15 = vpop.f32.mrf.mxu1 }
 0x1ac   : > { %v1598_v16 = vpop.f32.mrf.mxu0  ;;  %v1790_v17 = vpop.f32.mrf.mxu1 }
 0x1ad   : > { %v650_v16 = vld [vmem:[#allocation2 + $0x18] sm:$0xff] }
 0x1ae   : > { %v4586_v18 = vpop.f32.mrf.mxu0  ;;  %v4588_v19 = vpop.f32.mrf.mxu1 }
 0x1b0   : > { %v1603_v20 = vpop.f32.mrf.mxu0  ;;  %v1795_v21 = vpop.f32.mrf.mxu1 }
 0x1b2   : > { %v4590_v22 = vpop.f32.mrf.mxu0  ;;  %v4592_v23 = vpop.f32.mrf.mxu1 }
 0x1b4   : > { %v1606_v24 = vpop.f32.mrf.mxu0  ;;  %v1798_v25 = vpop.f32.mrf.mxu1 }
 0x1b5   : > { %v648_v25 = vld [vmem:[#allocation2 + $0x1b0] sm:$0xff] }
 0x1b6   : > { %v4594_v26 = vpop.f32.mrf.mxu0  ;;  %v4596_v27 = vpop.f32.mrf.mxu1 }
 0x1b8   : > { %v1611_v28 = vpop.f32.mrf.mxu0  ;;  %v1803_v29 = vpop.f32.mrf.mxu1 }
 0x1ba   : > { %v4598_v30 = vpop.f32.mrf.mxu0  ;;  %v4600_v31 = vpop.f32.mrf.mxu1 }
 0x1bc   : > { %v1614_v32 = vpop.f32.mrf.mxu0  ;;  %v1806_v33 = vpop.f32.mrf.mxu1 }
 0x1bd   : > { %v653_v33 = vld [vmem:[#allocation2 + $0x130] sm:$0xff] }
 0x1be   : > { %v4602_v34 = vpop.f32.mrf.mxu0  ;;  %v4604_v35 = vpop.f32.mrf.mxu1 }
 0x1c0   : > { %v1619_v36 = vpop.f32.mrf.mxu0  ;;  %v1811_v37 = vpop.f32.mrf.mxu1 }
 0x1c2   : > { %v4606_v38 = vpop.f32.mrf.mxu0  ;;  %v4608_v39 = vpop.f32.mrf.mxu1 }
 0x1c4   : > { %v1622_v40 = vpop.f32.mrf.mxu0  ;;  %v1814_v41 = vpop.f32.mrf.mxu1 }
 0x1c5   : > { %v651_v41 = vld [vmem:[#allocation2 + $0x50] sm:$0xff] }
 0x1c6   : > { %v4610_v42 = vpop.f32.mrf.mxu0  ;;  %v4612_v43 = vpop.f32.mrf.mxu1 }
 0x1c8   : > { %v1627_v44 = vpop.f32.mrf.mxu0  ;;  %v1819_v45 = vpop.f32.mrf.mxu1 }
 0x1ca   : > { %v4614_v46 = vpop.f32.mrf.mxu0  ;;  %v4616_v47 = vpop.f32.mrf.mxu1 }
 0x1cc   : > { %v1630_v48 = vpop.f32.mrf.mxu0  ;;  %v1822_v49 = vpop.f32.mrf.mxu1 }
 0x1cd   : > { %v654_v49 = vld [vmem:[#allocation2 + $0x48] sm:$0xff] }
 0x1ce   : > { %v4618_v50 = vpop.f32.mrf.mxu0  ;;  %v4620_v51 = vpop.f32.mrf.mxu1 }
 0x1d0   : > { %v1635_v52 = vpop.f32.mrf.mxu0  ;;  %v1827_v53 = vpop.f32.mrf.mxu1 }
 0x1d2   : > { %v4622_v54 = vpop.f32.mrf.mxu0  ;;  %v4624_v55 = vpop.f32.mrf.mxu1 }
 0x1d4   : > { %v1638_v56 = vpop.f32.mrf.mxu0  ;;  %v1830_v57 = vpop.f32.mrf.mxu1 }
 0x1d5   : > { %v652_v57 = vld [vmem:[#allocation2 + $0x168] sm:$0xff] }
 0x1d6   : > { %v4626_v60 = vpop.f32.mrf.mxu0  ;;  %v3620_v0 = vpop.f32.mrf.mxu1 }
 0x1d7   : > { %v1875_v1 = vadd.f32 %v3620_v0, %v1585_v2 }
 0x1d8   : > { %v1643_v4 = vpop.f32.mrf.mxu0  ;;  %v1866_v8 = vpop.f32.mrf.mxu1 }
 0x1d9   : > { %v2123_v9 = vadd.f32 %v1875_v1, %v649_v61  ;;  %v1867_v12 = vadd.f32 %v1866_v8, %v4564_v58  ;;  %v657_v4 = vld [vmem:[#allocation2 + $0x118] sm:$0xff] }
 0x1da   : > { %v4629_v13 = vpop.f32.mrf.mxu0  ;;  %v3621_v17 = vpop.f32.mrf.mxu1 }
 0x1db   : > { %2187 = vst [vmem:[#allocation2 + $0xd8] sm:$0xff] %v2123_v9  ;;  %v2121_v20 = vadd.f32 %v1867_v12, %v647_v5  ;;  %v1878_v21 = vadd.f32 %v3621_v17, %v4574_v6  ;;  %v655_v12 = vld [vmem:[#allocation2 + $0x180] sm:$0xff] }
 0x1dc   : > { %v1646_v24 = vpop.f32.mrf.mxu0  ;;  %v1869_v28 = vpop.f32.mrf.mxu1 }
 0x1dd   : > { %2185 = vst [vmem:[#allocation2 + $0xb0] sm:$0xff] %v2121_v20  ;;  %v2124_v29 = vadd.f32 %v1878_v21, %v650_v16  ;;  %v1870_v2 = vadd.f32 %v1869_v28, %v4568_v62  ;;  %v658_v21 = vld [vmem:[#allocation2 + $0x98] sm:$0xff] }
 0x1de   : > { %v4633_v32 = vpop.f32.mrf.mxu0  ;;  %v3624_v36 = vpop.f32.mrf.mxu1 }
 0x1df   : > { %2188 = vst [vmem:[#allocation2 + $0x18] sm:$0xff] %v2124_v29  ;;  %v2122_v58 = vadd.f32 %v1870_v2, %v648_v25  ;;  %v1891_v37 = vadd.f32 %v3624_v36, %v4586_v18  ;;  %v656_v29 = vld [vmem:[#allocation2 + $0x110] sm:$0xff] }
 0x1e0   : > { %v1651_v40 = vpop.f32.mrf.mxu0  ;;  %v1882_v44 = vpop.f32.mrf.mxu1 }
 0x1e1   : > { %2186 = vst [vmem:[#allocation2 + $0x1b0] sm:$0xff] %v2122_v58  ;;  %v2127_v6 = vadd.f32 %v1891_v37, %v653_v33  ;;  %v1883_v45 = vadd.f32 %v1882_v44, %v4578_v10  ;;  %v661_v58 = vld [vmem:[#allocation2 + $0x108] sm:$0xff]  ;;  %v659_v44 = vld [vmem:[#allocation2 + $0x120] sm:$0xff] }
 0x1e2   : > { %v4637_v48 = vpop.f32.mrf.mxu0  ;;  %v3625_v52 = vpop.f32.mrf.mxu1 }
 0x1e3   : > { %2191 = vst [vmem:[#allocation2 + $0x130] sm:$0xff] %v2127_v6  ;;  %v2125_v62 = vadd.f32 %v1883_v45, %v651_v41  ;;  %v1894_v53 = vadd.f32 %v3625_v52, %v4590_v22  ;;  %v662_v52 = vld [vmem:[#allocation2 + $0x60] sm:$0xff] }
 0x1e4   : > { %v1654_v56 = vpop.f32.mrf.mxu0  ;;  %v1885_v61 = vpop.f32.mrf.mxu1 }
 0x1e5   : > { %2189 = vst [vmem:[#allocation2 + $0x50] sm:$0xff] %v2125_v62  ;;  %v2128_v18 = vadd.f32 %v1894_v53, %v654_v49  ;;  %v1886_v0 = vadd.f32 %v1885_v61, %v4582_v14 }
 0x1e6   : > { %v4641_v1 = vpop.f32.mrf.mxu0  ;;  %v3628_v5 = vpop.f32.mrf.mxu1 }
 0x1e7   : > { %2192 = vst [vmem:[#allocation2 + $0x48] sm:$0xff] %v2128_v18  ;;  %v2126_v10 = vadd.f32 %v1886_v0, %v652_v57  ;;  %v1907_v8 = vadd.f32 %v3628_v5, %v4602_v34  ;;  %v660_v57 = vld [vmem:[#allocation2 + $0x150] sm:$0xff] }
 0x1e8   : > { %v1659_v9 = vpop.f32.mrf.mxu0  ;;  %v1898_v16 = vpop.f32.mrf.mxu1 }
 0x1e9   : > { %2190 = vst [vmem:[#allocation2 + $0x168] sm:$0xff] %v2126_v10  ;;  %v2131_v22 = vadd.f32 %v1907_v8, %v657_v4  ;;  %v1899_v17 = vadd.f32 %v1898_v16, %v4594_v26  ;;  %v665_v4 = vld [vmem:[#allocation2 + $0x138] sm:$0xff]  ;;  %v663_v9 = vld [vmem:[#allocation2 + $0xe0] sm:$0xff] }
 0x1ea   : > { %v4645_v20 = vpop.f32.mrf.mxu0  ;;  %v3629_v24 = vpop.f32.mrf.mxu1 }
 0x1eb   : > { %2195 = vst [vmem:[#allocation2 + $0x118] sm:$0xff] %v2131_v22  ;;  %v2129_v14 = vadd.f32 %v1899_v17, %v655_v12  ;;  %v1910_v25 = vadd.f32 %v3629_v24, %v4606_v38  ;;  %v666_v17 = vld [vmem:[#allocation2 + $0x140] sm:$0xff] }
 0x1ec   : > { %v1662_v28 = vpop.f32.mrf.mxu0  ;;  %v1901_v2 = vpop.f32.mrf.mxu1 }
 0x1ed   : > { %2193 = vst [vmem:[#allocation2 + $0x180] sm:$0xff] %v2129_v14  ;;  %v2132_v34 = vadd.f32 %v1910_v25, %v658_v21  ;;  %v1902_v33 = vadd.f32 %v1901_v2, %v4598_v30  ;;  %v664_v25 = vld [vmem:[#allocation2 + $0x188] sm:$0xff] }
 0x1ee   : > { %v1665_v36 = vpop.f32.mrf.mxu0  ;;  %v3632_v37 = vpop.f32.mrf.mxu1 }
 0x1ef   : > { %2196 = vst [vmem:[#allocation2 + $0x98] sm:$0xff] %v2132_v34  ;;  %v2130_v26 = vadd.f32 %v1902_v33, %v656_v29  ;;  %v1923_v40 = vadd.f32 %v3632_v37, %v4618_v50  ;;  %v669_v34 = vld [vmem:[#allocation2 + $0x1b8] sm:$0xff] }
 0x1f0   : > { %v1667_v41 = vpop.f32.mrf.mxu0  ;;  %v1914_v6 = vpop.f32.mrf.mxu1 }
 0x1f1   : > { %2194 = vst [vmem:[#allocation2 + $0x110] sm:$0xff] %v2130_v26  ;;  %v2135_v45 = vadd.f32 %v1923_v40, %v661_v58  ;;  %v1915_v38 = vadd.f32 %v1914_v6, %v4610_v42  ;;  %v667_v26 = vld [vmem:[#allocation2 + $0x80] sm:$0xff]  ;;  %v670_v6 = vld [vmem:[#allocation2 + $0x28] sm:$0xff] }
 0x1f2   : > { %v1668_v49 = vpop.f32.mrf.mxu0  ;;  %v3633_v62 = vpop.f32.mrf.mxu1 }
 0x1f3   : > { %2199 = vst [vmem:[#allocation2 + $0x108] sm:$0xff] %v2135_v45  ;;  %v2133_v53 = vadd.f32 %v1915_v38, %v659_v44  ;;  %v1926_v30 = vadd.f32 %v3633_v62, %v4622_v54  ;;  %v668_v62 = vld [vmem:[#allocation2 + $0x1a8] sm:$0xff] }
 0x1f4   : > { %v1670_v56 = vpop.f32.mrf.mxu0  ;;  %v1917_v61 = vpop.f32.mrf.mxu1 }
 0x1f5   : > { %2197 = vst [vmem:[#allocation2 + $0x120] sm:$0xff] %v2133_v53  ;;  %v2136_v18 = vadd.f32 %v1926_v30, %v662_v52  ;;  %v1918_v50 = vadd.f32 %v1917_v61, %v4614_v46 }
 0x1f6   : > { %v1673_v0 = vpop.f32.mrf.mxu0  ;;  %v3636_v5 = vpop.f32.mrf.mxu1 }
 0x1f7   : > { %2200 = vst [vmem:[#allocation2 + $0x60] sm:$0xff] %v2136_v18  ;;  %v2134_v10 = vadd.f32 %v1918_v50, %v660_v57  ;;  %v1939_v42 = vadd.f32 %v3636_v5, %v4633_v32  ;;  %v673_v57 = vld [vmem:[#allocation2 + $0x160] sm:$0xff] }
 0x1f8   : > { %v1675_v8 = vpop.f32.mrf.mxu0  ;;  %v1930_v12 = vpop.f32.mrf.mxu1 }
 0x1f9   : > { %2198 = vst [vmem:[#allocation2 + $0x150] sm:$0xff] %v2134_v10  ;;  %v2139_v16 = vadd.f32 %v1939_v42, %v665_v4  ;;  %v1931_v54 = vadd.f32 %v1930_v12, %v4626_v60  ;;  %v671_v4 = vld [vmem:[#allocation2 + $0x1e8] sm:$0xff]  ;;  %v674_v8 = vld [vmem:[#allocation2 + $0x30] sm:$0xff] }
 0x1fa   : > { %v1676_v22 = vpop.f32.mrf.mxu0  ;;  %v3637_v21 = vpop.f32.mrf.mxu1 }
 0x1fb   : > { %2203 = vst [vmem:[#allocation2 + $0x138] sm:$0xff] %v2139_v16  ;;  %v2137_v24 = vadd.f32 %v1931_v54, %v663_v9  ;;  %v1942_v46 = vadd.f32 %v3637_v21, %v4637_v48 }
 0x1fc   : > { %v1678_v14 = vpop.f32.mrf.mxu0  ;;  %v1933_v28 = vpop.f32.mrf.mxu1 }
 0x1fd   : > { %2201 = vst [vmem:[#allocation2 + $0xe0] sm:$0xff] %v2137_v24  ;;  %v2140_v29 = vadd.f32 %v1942_v46, %v666_v17  ;;  %v1934_v32 = vadd.f32 %v1933_v28, %v4629_v13  ;;  %v677_v14 = vld [vmem:[#allocation2 + $0xf0] sm:$0xff] }
 0x1fe   : > { %v1681_v2 = vpop.f32.mrf.mxu0  ;;  %v3640_v33 = vpop.f32.mrf.mxu1 }
 0x1ff   : > { %2204 = vst [vmem:[#allocation2 + $0x140] sm:$0xff] %v2140_v29  ;;  %v2138_v58 = vadd.f32 %v1934_v32, %v664_v25  ;;  %v1955_v60 = vadd.f32 %v3640_v33, %v1665_v36 }
 0x200   : > { %v1683_v37 = vpop.f32.mrf.mxu0  ;;  %v1946_v40 = vpop.f32.mrf.mxu1 }
 0x201   : > { %2202 = vst [vmem:[#allocation2 + $0x188] sm:$0xff] %v2138_v58  ;;  %v2143_v41 = vadd.f32 %v1955_v60, %v669_v34  ;;  %v1947_v48 = vadd.f32 %v1946_v40, %v4641_v1  ;;  %v678_v60 = vld [vmem:[#allocation2 + $0x8] sm:$0xff] }
 0x202   : > { %v1684_v44 = vpop.f32.mrf.mxu0  ;;  %v3641_v45 = vpop.f32.mrf.mxu1 }
 0x203   : > { %2207 = vst [vmem:[#allocation2 + $0x1b8] sm:$0xff] %v2143_v41  ;;  %v2141_v38 = vadd.f32 %v1947_v48, %v667_v26  ;;  %v1958_v52 = vadd.f32 %v3641_v45, %v1668_v49 }
 0x204   : > { %v1686_v13 = vpop.f32.mrf.mxu0  ;;  %v1949_v53 = vpop.f32.mrf.mxu1 }
 0x205   : > { %2205 = vst [vmem:[#allocation2 + $0x80] sm:$0xff] %v2141_v38  ;;  %v2144_v30 = vadd.f32 %v1958_v52, %v670_v6  ;;  %v1950_v36 = vadd.f32 %v1949_v53, %v4645_v20  ;;  %v672_v20 = vld [vmem:[#allocation2 + $0xf8] sm:$0xff] }
 0x206   : > { %v1689_v56 = vpop.f32.mrf.mxu0  ;;  %v3644_v61 = vpop.f32.mrf.mxu1 }
 0x207   : > { %2208 = vst [vmem:[#allocation2 + $0x28] sm:$0xff] %v2144_v30  ;;  %v2142_v18 = vadd.f32 %v1950_v36, %v668_v62  ;;  %v1971_v50 = vadd.f32 %v3644_v61, %v1681_v2  ;;  %v679_v62 = vld [vmem:[#allocation2 + $0x148] sm:$0xff] }
 0x208   : > { %v1691_v1 = vpop.f32.mrf.mxu0  ;;  %v1962_v5 = vpop.f32.mrf.mxu1 }
 0x209   : > { %2206 = vst [vmem:[#allocation2 + $0x1a8] sm:$0xff] %v2142_v18  ;;  %v2147_v10 = vadd.f32 %v1971_v50, %v673_v57  ;;  %v1963_v42 = vadd.f32 %v1962_v5, %v1673_v0  ;;  %v675_v0 = vld [vmem:[#allocation2 + $0x1e0] sm:$0xff]  ;;  %v680_v18 = vld [vmem:[#allocation2 + $0x1d0] sm:$0xff] }
 0x20a   : > { %v1692_v49 = vpop.f32.mrf.mxu0  ;;  %v3645_v9 = vpop.f32.mrf.mxu1 }
 0x20b   : > { %2211 = vst [vmem:[#allocation2 + $0x160] sm:$0xff] %v2147_v10  ;;  %v2145_v12 = vadd.f32 %v1963_v42, %v671_v4  ;;  %v1974_v16 = vadd.f32 %v3645_v9, %v1684_v44  ;;  %v681_v4 = vld [vmem:[#allocation2 + $0x100] sm:$0xff] }
 0x20c   : > { %v1694_v54 = vpop.f32.mrf.mxu0  ;;  %v1965_v17 = vpop.f32.mrf.mxu1 }
 0x20d   : > { %2209 = vst [vmem:[#allocation2 + $0x1e8] sm:$0xff] %v2145_v12  ;;  %v2148_v21 = vadd.f32 %v1974_v16, %v674_v8  ;;  %v1966_v24 = vadd.f32 %v1965_v17, %v1676_v22  ;;  %v676_v22 = vld [vmem:[#allocation2] sm:$0xff]  ;;  %v682_v16 = vld [vmem:[#allocation2 + $0xc8] sm:$0xff] }
 0x20e   : > { %v1697_v46 = vpop.f32.mrf.mxu0  ;;  %v3648_v25 = vpop.f32.mrf.mxu1 }
 0x20f   : > { %2212 = vst [vmem:[#allocation2 + $0x30] sm:$0xff] %v2148_v21  ;;  %v2146_v28 = vadd.f32 %v1966_v24, %v672_v20  ;;  %v1987_v29 = vadd.f32 %v3648_v25, %v1697_v46 }
 0x210   : > { %v1699_v32 = vpop.f32.mrf.mxu0  ;;  %v1978_v2 = vpop.f32.mrf.mxu1 }
 0x211   : > { %2210 = vst [vmem:[#allocation2 + $0xf8] sm:$0xff] %v2146_v28  ;;  %v2151_v34 = vadd.f32 %v1987_v29, %v677_v14  ;;  %v1979_v33 = vadd.f32 %v1978_v2, %v1689_v56  ;;  %v683_v14 = vld [vmem:[#allocation2 + $0x40] sm:$0xff] }
 0x212   : > { %v1700_v58 = vpop.f32.mrf.mxu0  ;;  %v3649_v37 = vpop.f32.mrf.mxu1 }
 0x213   : > { %2215 = vst [vmem:[#allocation2 + $0xf0] sm:$0xff] %v2151_v34  ;;  %v2149_v26 = vadd.f32 %v1979_v33, %v675_v0  ;;  %v1990_v40 = vadd.f32 %v3649_v37, %v1700_v58  ;;  %v684_v34 = vld [vmem:[#allocation2 + $0x1f8] sm:$0xff] }
 0x214   : > { %v1702_v41 = vpop.f32.mrf.mxu0  ;;  %v1981_v48 = vpop.f32.mrf.mxu1 }
 0x215   : > { %2213 = vst [vmem:[#allocation2 + $0x1e0] sm:$0xff] %v2149_v26  ;;  %v2152_v44 = vadd.f32 %v1990_v40, %v678_v60  ;;  %v1982_v6 = vadd.f32 %v1981_v48, %v1692_v49  ;;  %v685_v41 = vld [vmem:[#allocation2 + $0x20] sm:$0xff] }
 0x216   : > { %v1705_v45 = vpop.f32.mrf.mxu0  ;;  %v3652_v38 = vpop.f32.mrf.mxu1 }
 0x217   : > { %2216 = vst [vmem:[#allocation2 + $0x8] sm:$0xff] %v2152_v44  ;;  %v2150_v52 = vadd.f32 %v1982_v6, %v676_v22 }
 0x218   : > { %v1707_v13 = vpop.f32.mrf.mxu0  ;;  %v1994_v53 = vpop.f32.mrf.mxu1 }
 0x219   : > { %2214 = vst [vmem:[#allocation2] sm:$0xff] %v2150_v52  ;;  %v1995_v30 = vadd.f32 %v1994_v53, %v1705_v45  ;;  %v686_v52 = vld [vmem:[#allocation2 + $0x128] sm:$0xff] }
 0x21a   : > { %v1708_v36 = vpop.f32.mrf.mxu0  ;;  %v3653_v56 = vpop.f32.mrf.mxu1 }
 0x21b   : > { %v2153_v57 = vadd.f32 %v1995_v30, %v679_v62 }
 0x21c   : > { %v1710_v61 = vpop.f32.mrf.mxu0  ;;  %v1997_v50 = vpop.f32.mrf.mxu1 }
 0x21d   : > { %2217 = vst [vmem:[#allocation2 + $0x148] sm:$0xff] %v2153_v57  ;;  %v1998_v1 = vadd.f32 %v1997_v50, %v1708_v36  ;;  %v687_v57 = vld [vmem:[#allocation2 + $0x1a0] sm:$0xff] }
 0x21e   : > { %v1713_v5 = vpop.f32.mrf.mxu0  ;;  %v3656_v10 = vpop.f32.mrf.mxu1 }
 0x21f   : > { %v2154_v42 = vadd.f32 %v1998_v1, %v680_v18  ;;  %v2003_v49 = vadd.f32 %v3652_v38, %v1713_v5  ;;  %v697_v18 = vld [vmem:[#allocation2 + $0xa8] sm:$0xff] }
 0x220   : > { %v1715_v8 = vpop.f32.mrf.mxu0  ;;  %v2010_v9 = vpop.f32.mrf.mxu1 }
 0x221   : > { %2218 = vst [vmem:[#allocation2 + $0x1d0] sm:$0xff] %v2154_v42  ;;  %v2155_v12 = vadd.f32 %v2003_v49, %v681_v4 }
 0x222   : > { %v1716_v54 = vpop.f32.mrf.mxu0  ;;  %v3657_v20 = vpop.f32.mrf.mxu1 }
 0x223   : > { %2219 = vst [vmem:[#allocation2 + $0x100] sm:$0xff] %v2155_v12  ;;  %v2006_v17 = vadd.f32 %v3653_v56, %v1716_v54  ;;  %v688_v12 = vld [vmem:[#allocation2 + $0x1f0] sm:$0xff]  ;;  %v698_v54 = vld [vmem:[#allocation2 + $0x1c8] sm:$0xff] }
 0x224   : > { %v1718_v21 = vpop.f32.mrf.mxu0  ;;  %v2013_v24 = vpop.f32.mrf.mxu1 }
 0x225   : > { %v2156_v46 = vadd.f32 %v2006_v17, %v682_v16 }
 0x226   : > { %v1721_v25 = vpop.f32.mrf.mxu0  ;;  %v4659_v28 = vpop.f32.mrf.mxu1 }
 0x227   : > { %2220 = vst [vmem:[#allocation2 + $0xc8] sm:$0xff] %v2156_v46  ;;  %v2011_v29 = vadd.f32 %v2010_v9, %v1721_v25 }
 0x228   : > { %v1723_v32 = vpop.f32.mrf.mxu0  ;;  %v2026_v0 = vpop.f32.mrf.mxu1 }
 0x229   : > { %v2157_v2 = vadd.f32 %v2011_v29, %v683_v14  ;;  %v696_v14 = vld [vmem:[#allocation2 + $0x88] sm:$0xff] }
 0x22a   : > { %v1724_v33 = vpop.f32.mrf.mxu0  ;;  %v4661_v58 = vpop.f32.mrf.mxu1 }
 0x22b   : > { %2221 = vst [vmem:[#allocation2 + $0x40] sm:$0xff] %v2157_v2  ;;  %v2014_v60 = vadd.f32 %v2013_v24, %v1724_v33  ;;  %v701_v2 = vld [vmem:[#allocation2 + $0x68] sm:$0xff] }
 0x22c   : > { %v1726_v37 = vpop.f32.mrf.mxu0  ;;  %v2029_v26 = vpop.f32.mrf.mxu1 }
 0x22d   : > { %v2158_v40 = vadd.f32 %v2014_v60, %v684_v34 }
 0x22e   : > { %v1729_v22 = vpop.f32.mrf.mxu0  ;;  %v4663_v48 = vpop.f32.mrf.mxu1 }
 0x22f   : > { %2222 = vst [vmem:[#allocation2 + $0x1f8] sm:$0xff] %v2158_v40  ;;  %v2019_v44 = vadd.f32 %v3656_v10, %v1729_v22  ;;  %v695_v10 = vld [vmem:[#allocation2 + $0xb8] sm:$0xff] }
 0x230   : > { %v1731_v6 = vpop.f32.mrf.mxu0  ;;  %v4665_v45 = vpop.f32.mrf.mxu1 }
 0x231   : > { %v2159_v38 = vadd.f32 %v2019_v44, %v685_v41 }
 0x232   : > { %v1732_v13 = vpop.f32.mrf.mxu0  ;;  %v4667_v62 = vpop.f32.mrf.mxu1 }
 0x233   : > { %2223 = vst [vmem:[#allocation2 + $0x20] sm:$0xff] %v2159_v38  ;;  %v2022_v53 = vadd.f32 %v3657_v20, %v1732_v13  ;;  %v702_v38 = vld [vmem:[#allocation2 + $0x190] sm:$0xff] }
 0x234   : > { %v1734_v30 = vpop.f32.mrf.mxu0  ;;  %v4669_v36 = vpop.f32.mrf.mxu1 }
 0x235   : > { %v2160_v56 = vadd.f32 %v2022_v53, %v686_v52  ;;  %v700_v30 = vld [vmem:[#allocation2 + $0x178] sm:$0xff] }
 0x236   : > { %v1737_v61 = vpop.f32.mrf.mxu0  ;;  %v3668_v50 = vpop.f32.mrf.mxu1 }
 0x237   : > { %2224 = vst [vmem:[#allocation2 + $0x128] sm:$0xff] %v2160_v56  ;;  %v2027_v1 = vadd.f32 %v2026_v0, %v1737_v61  ;;  %v2067_v4 = vadd.f32 %v3668_v50, %v4572_v3  ;;  %v689_v0 = vld [vmem:[#allocation2 + $0xe8] sm:$0xff] }
 0x238   : > { %v1739_v5 = vpop.f32.mrf.mxu0  ;;  %v2058_v42 = vpop.f32.mrf.mxu1 }
 0x239   : > { %v2161_v49 = vadd.f32 %v2027_v1, %v687_v57  ;;  %v2171_v8 = vadd.f32 %v2067_v4, %v697_v18  ;;  %v2059_v9 = vadd.f32 %v2058_v42, %v4566_v59  ;;  %v705_v1 = vld [vmem:[#allocation2 + $0xc0] sm:$0xff]  ;;  %v703_v42 = vld [vmem:[#allocation2 + $0x198] sm:$0xff] }
 0x23a   : > { %v1740_v16 = vpop.f32.mrf.mxu0  ;;  %v3669_v20 = vpop.f32.mrf.mxu1 }
 0x23b   : > { %2225 = vst [vmem:[#allocation2 + $0x1a0] sm:$0xff] %v2161_v49  ;;  %2235 = vst [vmem:[#allocation2 + $0xa8] sm:$0xff] %v2171_v8  ;;  %v2169_v17 = vadd.f32 %v2059_v9, %v695_v10  ;;  %v2030_v21 = vadd.f32 %v2029_v26, %v1740_v16  ;;  %v2070_v24 = vadd.f32 %v3669_v20, %v4576_v7  ;;  %v699_v26 = vld [vmem:[#allocation2 + $0x170] sm:$0xff] }
 0x23c   : > { %v1742_v46 = vpop.f32.mrf.mxu0  ;;  %v2061_v3 = vpop.f32.mrf.mxu1 }
 0x23d   : > { %2233 = vst [vmem:[#allocation2 + $0xb8] sm:$0xff] %v2169_v17  ;;  %v2162_v25 = vadd.f32 %v2030_v21, %v688_v12  ;;  %v2172_v29 = vadd.f32 %v2070_v24, %v698_v54  ;;  %v2062_v32 = vadd.f32 %v2061_v3, %v4570_v63  ;;  %v690_v63 = vld [vmem:[#allocation2 + $0x78] sm:$0xff]  ;;  %v706_v54 = vld [vmem:[#allocation2 + $0x1c0] sm:$0xff] }
 0x23e   : > { %v1745_v59 = vpop.f32.mrf.mxu0  ;;  %v3672_v34 = vpop.f32.mrf.mxu1  ;;  %v704_v24 = vld [vmem:[#allocation2 + $0x38] sm:$0xff] }
 0x23f   : > { %2226 = vst [vmem:[#allocation2 + $0x1f0] sm:$0xff] %v2162_v25  ;;  %2236 = vst [vmem:[#allocation2 + $0x1c8] sm:$0xff] %v2172_v29  ;;  %v2170_v33 = vadd.f32 %v2062_v32, %v696_v14  ;;  %v2035_v60 = vadd.f32 %v4659_v28, %v1745_v59  ;;  %v2083_v37 = vadd.f32 %v3672_v34, %v4588_v19  ;;  %v709_v32 = vld [vmem:[#allocation2 + $0x58] sm:$0xff] }
 0x240   : > { %v1747_v7 = vpop.f32.mrf.mxu0  ;;  %v2074_v40 = vpop.f32.mrf.mxu1  ;;  %v707_v34 = vld [vmem:[#allocation2 + $0x158] sm:$0xff] }
 0x241   : > { %2234 = vst [vmem:[#allocation2 + $0x88] sm:$0xff] %v2170_v33  ;;  %v2163_v41 = vadd.f32 %v2035_v60, %v689_v0  ;;  %v2175_v22 = vadd.f32 %v2083_v37, %v701_v2  ;;  %v2075_v44 = vadd.f32 %v2074_v40, %v4580_v11  ;;  %v691_v11 = vld [vmem:[#allocation2 + $0x70] sm:$0xff]  ;;  %v710_v40 = vld [vmem:[#allocation2 + $0xa0] sm:$0xff] }
 0x242   : > { %v1748_v6 = vpop.f32.mrf.mxu0  ;;  %v3673_v52 = vpop.f32.mrf.mxu1 }
 0x243   : > { %2227 = vst [vmem:[#allocation2 + $0xe8] sm:$0xff] %v2163_v41  ;;  %2239 = vst [vmem:[#allocation2 + $0x68] sm:$0xff] %v2175_v22  ;;  %v2173_v13 = vadd.f32 %v2075_v44, %v699_v26  ;;  %v2038_v53 = vadd.f32 %v4661_v58, %v1748_v6  ;;  %v2086_v28 = vadd.f32 %v3673_v52, %v4592_v23 }
 0x244   : > { %v1750_v19 = vpop.f32.mrf.mxu0  ;;  %v2077_v56 = vpop.f32.mrf.mxu1 }
 0x245   : > { %2237 = vst [vmem:[#allocation2 + $0x170] sm:$0xff] %v2173_v13  ;;  %v2164_v57 = vadd.f32 %v2038_v53, %v690_v63  ;;  %v2176_v61 = vadd.f32 %v2086_v28, %v702_v38  ;;  %v2078_v18 = vadd.f32 %v2077_v56, %v4584_v15  ;;  %v692_v15 = vld [vmem:[#allocation2 + $0x90] sm:$0xff] }
 0x246   : > { %v1753_v50 = vpop.f32.mrf.mxu0  ;;  %v3676_v4 = vpop.f32.mrf.mxu1  ;;  %v708_v63 = vld [vmem:[#allocation2 + $0x10] sm:$0xff] }
 0x247   : > { %2228 = vst [vmem:[#allocation2 + $0x78] sm:$0xff] %v2164_v57  ;;  %2240 = vst [vmem:[#allocation2 + $0x190] sm:$0xff] %v2176_v61  ;;  %v2174_v5 = vadd.f32 %v2078_v18, %v700_v30  ;;  %v2043_v10 = vadd.f32 %v4665_v45, %v1753_v50  ;;  %v2099_v58 = vadd.f32 %v3676_v4, %v4604_v35 }
 0x248   : > { %v1755_v23 = vpop.f32.mrf.mxu0  ;;  %v2090_v49 = vpop.f32.mrf.mxu1 }
 0x249   : > { %2238 = vst [vmem:[#allocation2 + $0x178] sm:$0xff] %v2174_v5  ;;  %v2165_v8 = vadd.f32 %v2043_v10, %v691_v11  ;;  %v2179_v9 = vadd.f32 %v2099_v58, %v705_v1  ;;  %v2091_v12 = vadd.f32 %v2090_v49, %v4596_v27  ;;  %v693_v27 = vld [vmem:[#allocation2 + $0x1d8] sm:$0xff] }
 0x24a   : > { %v1756_v16 = vpop.f32.mrf.mxu0  ;;  %v3677_v20 = vpop.f32.mrf.mxu1 }
 0x24b   : > { %2229 = vst [vmem:[#allocation2 + $0x70] sm:$0xff] %v2165_v8  ;;  %2243 = vst [vmem:[#allocation2 + $0xc0] sm:$0xff] %v2179_v9  ;;  %v2177_v17 = vadd.f32 %v2091_v12, %v703_v42  ;;  %v2046_v21 = vadd.f32 %v4669_v36, %v1756_v16  ;;  %v2102_v45 = vadd.f32 %v3677_v20, %v4608_v39 }
 0x24c   : > { %v1758_v35 = vpop.f32.mrf.mxu0  ;;  %v2093_v46 = vpop.f32.mrf.mxu1 }
 0x24d   : > { %2241 = vst [vmem:[#allocation2 + $0x198] sm:$0xff] %v2177_v17  ;;  %v2166_v14 = vadd.f32 %v2046_v21, %v692_v15  ;;  %v2180_v3 = vadd.f32 %v2102_v45, %v706_v54  ;;  %v2094_v25 = vadd.f32 %v2093_v46, %v4600_v31  ;;  %v694_v31 = vld [vmem:[#allocation2 + $0xd0] sm:$0xff] }
 0x24e   : > { %v1761_v29 = vpop.f32.mrf.mxu0  ;;  %v3680_v0 = vpop.f32.mrf.mxu1 }
 0x24f   : > { %2230 = vst [vmem:[#allocation2 + $0x90] sm:$0xff] %v2166_v14  ;;  %2244 = vst [vmem:[#allocation2 + $0x1c0] sm:$0xff] %v2180_v3  ;;  %v2178_v59 = vadd.f32 %v2094_v25, %v704_v24  ;;  %v2051_v2 = vadd.f32 %v4663_v48, %v1761_v29  ;;  %v2115_v36 = vadd.f32 %v3680_v0, %v4620_v51 }
 0x250   : > { %v1763_v39 = vpop.f32.mrf.mxu0  ;;  %v2106_v33 = vpop.f32.mrf.mxu1 }
 0x251   : > { %2242 = vst [vmem:[#allocation2 + $0x38] sm:$0xff] %v2178_v59  ;;  %v2167_v60 = vadd.f32 %v2051_v2, %v693_v27  ;;  %v2183_v37 = vadd.f32 %v2115_v36, %v709_v32  ;;  %v2107_v7 = vadd.f32 %v2106_v33, %v4612_v43 }
 0x252   : > { %v1764_v26 = vpop.f32.mrf.mxu0  ;;  %v3681_v41 = vpop.f32.mrf.mxu1 }
 0x253   : > { %2231 = vst [vmem:[#allocation2 + $0x1d8] sm:$0xff] %v2167_v60  ;;  %2247 = vst [vmem:[#allocation2 + $0x58] sm:$0xff] %v2183_v37  ;;  %v2181_v22 = vadd.f32 %v2107_v7, %v707_v34  ;;  %v2054_v44 = vadd.f32 %v4667_v62, %v1764_v26  ;;  %v2118_v48 = vadd.f32 %v3681_v41, %v4624_v55 }
 0x254   : > { %v1766_v51 = vpop.f32.mrf.mxu0  ;;  %v2109_v6 = vpop.f32.mrf.mxu1 }
 0x255   : > { %2245 = vst [vmem:[#allocation2 + $0x158] sm:$0xff] %v2181_v22  ;;  %v2168_v38 = vadd.f32 %v2054_v44, %v694_v31  ;;  %v2184_v52 = vadd.f32 %v2118_v48, %v710_v40  ;;  %v2110_v13 = vadd.f32 %v2109_v6, %v4616_v47  ;;  %2252 = sbr.rel (%p3238_p13) target bundleno = 665 (0x299), region = 70 }
 0x257   : > { %2232 = vst [vmem:[#allocation2 + $0xd0] sm:$0xff] %v2168_v38  ;;  %2248 = vst [vmem:[#allocation2 + $0xa0] sm:$0xff] %v2184_v52  ;;  %v2182_v43 = vadd.f32 %v2110_v13, %v708_v63 }
 0x259   : > { %2246 = vst [vmem:[#allocation2 + $0x10] sm:$0xff] %v2182_v43 }
 0x25a   : > { %v2253_v53 = vld [vmem:[#allocation2 + $0xb0] sm:$0xff]  ;;  %v4697_v55 = vld [vmem:[%s4887_s2] ss:$0 sm:$0xff]  ;;  %v2255_v30 = vld [vmem:[#allocation2 + $0xd8] sm:$0xff] }
 0x25b   : > { %v2254_v28 = vld [vmem:[#allocation2 + $0x1b0] sm:$0xff]  ;;  %v2324_v62 = vmul.f32 %v4697_v55, %v2253_v53  ;;  %v4704_v47 = vld [vmem:[%s4888_s3] ss:$0 sm:$0xff]  ;;  %v2256_v56 = vld [vmem:[#allocation2 + $0x18] sm:$0xff]  ;;  %v2326_v57 = vmul.f32 %v4697_v55, %v2255_v30 }
 0x25c   : > { %v2325_v19 = vmul.f32 %v4697_v55, %v2254_v28  ;;  %v2327_v61 = vmul.f32 %v4697_v55, %v2256_v56  ;;  %v2257_v18 = vld [vmem:[#allocation2 + $0x50] sm:$0xff]  ;;  %v2258_v11 = vld [vmem:[#allocation2 + $0x168] sm:$0xff]  ;;  %v2261_v9 = vld [vmem:[#allocation2 + $0x180] sm:$0xff] }
 0x25d   : > { %v2259_v50 = vld [vmem:[#allocation2 + $0x130] sm:$0xff]  ;;  %v2395_v1 = vadd.f32 %v4704_v47, %v2324_v62  ;;  %v2328_v5 = vmul.f32 %v4697_v55, %v2257_v18  ;;  %v2329_v10 = vmul.f32 %v4697_v55, %v2258_v11  ;;  %v2260_v58 = vld [vmem:[#allocation2 + $0x48] sm:$0xff]  ;;  %v2397_v23 = vadd.f32 %v4704_v47, %v2326_v57  ;;  %v2263_v24 = vld [vmem:[#allocation2 + $0x118] sm:$0xff] }
 0x25e   : > { %v2396_v4 = vadd.f32 %v4704_v47, %v2325_v19  ;;  %v2398_v42 = vadd.f32 %v4704_v47, %v2327_v61  ;;  %v2330_v49 = vmul.f32 %v4697_v55, %v2259_v50  ;;  %v2331_v8 = vmul.f32 %v4697_v55, %v2260_v58  ;;  %v2262_v20 = vld [vmem:[#allocation2 + $0x110] sm:$0xff]  ;;  %v2264_v46 = vld [vmem:[#allocation2 + $0x98] sm:$0xff]  ;;  %v2265_v29 = vld [vmem:[#allocation2 + $0x120] sm:$0xff] }
 0x25f   : > { %v2459_v12 = vmax.f32 %v2395_v1, 0.0  ;;  %v2399_v16 = vadd.f32 %v4704_v47, %v2328_v5  ;;  %v2400_v54 = vadd.f32 %v4704_v47, %v2329_v10  ;;  %v2461_v17 = vmax.f32 %v2397_v23, 0.0  ;;  %v2266_v32 = vld [vmem:[#allocation2 + $0x150] sm:$0xff]  ;;  %v2267_v39 = vld [vmem:[#allocation2 + $0x108] sm:$0xff]  ;;  %v2268_v7 = vld [vmem:[#allocation2 + $0x60] sm:$0xff] }
 0x260   : > { %v2460_v15 = vmax.f32 %v2396_v4, 0.0  ;;  %v2462_v21 = vmax.f32 %v2398_v42, 0.0  ;;  %v2401_v45 = vadd.f32 %v4704_v47, %v2330_v49  ;;  %v2402_v35 = vadd.f32 %v4704_v47, %v2331_v8  ;;  %v2269_v22 = vld [vmem:[#allocation2 + $0xe0] sm:$0xff]  ;;  %v2270_v43 = vld [vmem:[#allocation2 + $0x188] sm:$0xff]  ;;  %v2271_v30 = vld [vmem:[#allocation2 + $0x138] sm:$0xff] }
 0x261   : > { %v2463_v3 = vmax.f32 %v2399_v16, 0.0  ;;  %v2464_v25 = vmax.f32 %v2400_v54, 0.0  ;;  %v2332_v27 = vmul.f32 %v4697_v55, %v2261_v9  ;;  %v2333_v36 = vmul.f32 %v4697_v55, %v2262_v20  ;;  %v2272_v56 = vld [vmem:[#allocation2 + $0x140] sm:$0xff]  ;;  %v2274_v1 = vld [vmem:[#allocation2 + $0x1a8] sm:$0xff]  ;;  %v2275_v23 = vld [vmem:[#allocation2 + $0x1b8] sm:$0xff] }
 0x262   : > { %v3374_v14 = vpack.c.bf16 %v2460_v15, %v2459_v12  ;;  %v3379_v0 = vpack.c.bf16 %v2462_v21, %v2461_v17  ;;  %v2465_v59 = vmax.f32 %v2401_v45, 0.0  ;;  %v2466_v2 = vmax.f32 %v2402_v35, 0.0  ;;  %v2273_v50 = vld [vmem:[#allocation2 + $0x80] sm:$0xff]  ;;  %v2276_v12 = vld [vmem:[#allocation2 + $0x28] sm:$0xff] }
 0x263   : > { %v3384_v34 = vpack.c.bf16 %v2464_v25, %v2463_v3  ;;  %v2403_v33 = vadd.f32 %v4704_v47, %v2332_v27  ;;  %v2334_v60 = vmul.f32 %v4697_v55, %v2263_v24  ;;  %v2335_v37 = vmul.f32 %v4697_v55, %v2264_v46  ;;  %v2277_v17 = vld [vmem:[#allocation2 + $0x1e8] sm:$0xff]  ;;  %v2278_v27 = vld [vmem:[#allocation2 + $0xf8] sm:$0xff] }
 0x264   : > { %3375 = vst [vmem:[%s4343_s8] sm:$0xff] %v3374_v14   ;;  %3531 = vst [vmem:[%s4343_s8 + $0x8] sm:$0xff] %v3379_v0   ;;  %v3389_v31 = vpack.c.bf16 %v2466_v2, %v2465_v59  ;;  %v2404_v26 = vadd.f32 %v4704_v47, %v2333_v36  ;;  %v2336_v40 = vmul.f32 %v4697_v55, %v2265_v29  ;;  %v2279_v2 = vld [vmem:[#allocation2 + $0x160] sm:$0xff]  ;;  %v2280_v36 = vld [vmem:[#allocation2 + $0x30] sm:$0xff] }
 0x265   : > { %v2337_v41 = vmul.f32 %v4697_v55, %v2266_v32  ;;  %3532 = vst [vmem:[%s4343_s8 + $0x10] sm:$0xff] %v3384_v34   ;;  %v2467_v44 = vmax.f32 %v2403_v33, 0.0  ;;  %v2405_v48 = vadd.f32 %v4704_v47, %v2334_v60  ;;  %v2406_v51 = vadd.f32 %v4704_v47, %v2335_v37  ;;  %v2281_v37 = vld [vmem:[#allocation2 + $0x1e0] sm:$0xff] }
 0x266   : > { %v2338_v63 = vmul.f32 %v4697_v55, %v2267_v39  ;;  %3533 = vst [vmem:[%s4343_s8 + $0x18] sm:$0xff] %v3389_v31   ;;  %v2468_v6 = vmax.f32 %v2404_v26, 0.0  ;;  %v2407_v38 = vadd.f32 %v4704_v47, %v2336_v40  ;;  %v2339_v13 = vmul.f32 %v4697_v55, %v2268_v7  ;;  %v2282_v7 = vld [vmem:[#allocation2] sm:$0xff] }
 0x267   : > { %v2408_v52 = vadd.f32 %v4704_v47, %v2337_v41  ;;  %v2469_v53 = vmax.f32 %v2405_v48, 0.0  ;;  %v2470_v28 = vmax.f32 %v2406_v51, 0.0  ;;  %v2340_v19 = vmul.f32 %v4697_v55, %v2269_v22  ;;  %v2283_v22 = vld [vmem:[#allocation2 + $0xf0] sm:$0xff] }
 0x268   : > { %v2409_v62 = vadd.f32 %v4704_v47, %v2338_v63  ;;  %v3394_v57 = vpack.c.bf16 %v2468_v6, %v2467_v44  ;;  %v2471_v61 = vmax.f32 %v2407_v38, 0.0  ;;  %v2410_v11 = vadd.f32 %v4704_v47, %v2339_v13  ;;  %v2284_v6 = vld [vmem:[#allocation2 + $0x8] sm:$0xff] }
 0x269   : > { %v2472_v18 = vmax.f32 %v2408_v52, 0.0  ;;  %v3399_v4 = vpack.c.bf16 %v2470_v28, %v2469_v53  ;;  %v2341_v10 = vmul.f32 %v4697_v55, %v2270_v43  ;;  %v2411_v58 = vadd.f32 %v4704_v47, %v2340_v19  ;;  %v2285_v53 = vld [vmem:[#allocation2 + $0x148] sm:$0xff] }
 0x26a   : > { %v2473_v5 = vmax.f32 %v2409_v62, 0.0  ;;  %3534 = vst [vmem:[%s4343_s8 + $0x20] sm:$0xff] %v3394_v57   ;;  %v2474_v49 = vmax.f32 %v2410_v11, 0.0  ;;  %v2342_v8 = vmul.f32 %v4697_v55, %v2271_v30  ;;  %v2343_v9 = vmul.f32 %v4697_v55, %v2272_v56  ;;  %v2286_v11 = vld [vmem:[#allocation2 + $0x1d0] sm:$0xff] }
 0x26b   : > { %v3404_v42 = vpack.c.bf16 %v2472_v18, %v2471_v61  ;;  %3535 = vst [vmem:[%s4343_s8 + $0x28] sm:$0xff] %v3399_v4   ;;  %v2412_v15 = vadd.f32 %v4704_v47, %v2341_v10  ;;  %v2475_v16 = vmax.f32 %v2411_v58, 0.0  ;;  %v2344_v54 = vmul.f32 %v4697_v55, %v2273_v50  ;;  %v2287_v10 = vld [vmem:[#allocation2 + $0x100] sm:$0xff]  ;;  %v2288_v58 = vld [vmem:[#allocation2 + $0xc8] sm:$0xff] }
 0x26c   : > { %v2345_v20 = vmul.f32 %v4697_v55, %v2274_v1  ;;  %v3409_v21 = vpack.c.bf16 %v2474_v49, %v2473_v5  ;;  %v2413_v45 = vadd.f32 %v4704_v47, %v2342_v8  ;;  %v2414_v35 = vadd.f32 %v4704_v47, %v2343_v9  ;;  %v2289_v9 = vld [vmem:[#allocation2 + $0x40] sm:$0xff] }
 0x26d   : > { %3536 = vst [vmem:[%s4343_s8 + $0x30] sm:$0xff] %v3404_v42   ;;  %v2346_v24 = vmul.f32 %v4697_v55, %v2275_v23  ;;  %v2476_v46 = vmax.f32 %v2412_v15, 0.0  ;;  %v2415_v14 = vadd.f32 %v4704_v47, %v2344_v54  ;;  %v2347_v25 = vmul.f32 %v4697_v55, %v2276_v12  ;;  %v2290_v12 = vld [vmem:[#allocation2 + $0x1f8] sm:$0xff] }
 0x26e   : > { %v2416_v3 = vadd.f32 %v4704_v47, %v2345_v20  ;;  %3537 = vst [vmem:[%s4343_s8 + $0x38] sm:$0xff] %v3409_v21   ;;  %v2477_v29 = vmax.f32 %v2413_v45, 0.0  ;;  %v2478_v32 = vmax.f32 %v2414_v35, 0.0  ;;  %v2348_v59 = vmul.f32 %v4697_v55, %v2277_v17  ;;  %v2291_v17 = vld [vmem:[#allocation2 + $0x20] sm:$0xff] }
 0x26f   : > { %v2417_v0 = vadd.f32 %v4704_v47, %v2346_v24  ;;  %v3414_v39 = vpack.c.bf16 %v2476_v46, %v2475_v16  ;;  %v2479_v34 = vmax.f32 %v2415_v14, 0.0  ;;  %v2418_v60 = vadd.f32 %v4704_v47, %v2347_v25  ;;  %v2292_v46 = vld [vmem:[#allocation2 + $0x128] sm:$0xff] }
 0x270   : > { %v2480_v33 = vmax.f32 %v2416_v3, 0.0  ;;  %v3419_v31 = vpack.c.bf16 %v2478_v32, %v2477_v29  ;;  %v2349_v40 = vmul.f32 %v4697_v55, %v2278_v27  ;;  %v2419_v41 = vadd.f32 %v4704_v47, %v2348_v59  ;;  %v2293_v29 = vld [vmem:[#allocation2 + $0x1a0] sm:$0xff] }
 0x271   : > { %v2481_v26 = vmax.f32 %v2417_v0, 0.0  ;;  %3538 = vst [vmem:[%s4343_s8 + $0x40] sm:$0xff] %v3414_v39   ;;  %v2482_v48 = vmax.f32 %v2418_v60, 0.0  ;;  %v2350_v51 = vmul.f32 %v4697_v55, %v2279_v2  ;;  %v2351_v63 = vmul.f32 %v4697_v55, %v2280_v36  ;;  %v2294_v60 = vld [vmem:[#allocation2 + $0x1f0] sm:$0xff] }
 0x272   : > { %v3424_v44 = vpack.c.bf16 %v2480_v33, %v2479_v34  ;;  %3539 = vst [vmem:[%s4343_s8 + $0x48] sm:$0xff] %v3419_v31   ;;  %v2420_v38 = vadd.f32 %v4704_v47, %v2349_v40  ;;  %v2483_v52 = vmax.f32 %v2419_v41, 0.0  ;;  %v2352_v13 = vmul.f32 %v4697_v55, %v2281_v37  ;;  %v2295_v40 = vld [vmem:[#allocation2 + $0xe8] sm:$0xff]  ;;  %v2296_v41 = vld [vmem:[#allocation2 + $0x78] sm:$0xff] }
 0x273   : > { %v2353_v43 = vmul.f32 %v4697_v55, %v2282_v7  ;;  %v3429_v28 = vpack.c.bf16 %v2482_v48, %v2481_v26  ;;  %v2421_v62 = vadd.f32 %v4704_v47, %v2350_v51  ;;  %v2422_v19 = vadd.f32 %v4704_v47, %v2351_v63  ;;  %v2297_v63 = vld [vmem:[#allocation2 + $0x70] sm:$0xff] }
 0x274   : > { %3540 = vst [vmem:[%s4343_s8 + $0x50] sm:$0xff] %v3424_v44   ;;  %v2354_v30 = vmul.f32 %v4697_v55, %v2283_v22  ;;  %v2484_v56 = vmax.f32 %v2420_v38, 0.0  ;;  %v2423_v57 = vadd.f32 %v4704_v47, %v2352_v13  ;;  %v2355_v18 = vmul.f32 %v4697_v55, %v2284_v6  ;;  %v2298_v6 = vld [vmem:[#allocation2 + $0x90] sm:$0xff] }
 0x275   : > { %v2424_v61 = vadd.f32 %v4704_v47, %v2353_v43  ;;  %3541 = vst [vmem:[%s4343_s8 + $0x58] sm:$0xff] %v3429_v28   ;;  %v2485_v50 = vmax.f32 %v2421_v62, 0.0  ;;  %v2486_v1 = vmax.f32 %v2422_v19, 0.0  ;;  %v2356_v5 = vmul.f32 %v4697_v55, %v2285_v53  ;;  %v2299_v53 = vld [vmem:[#allocation2 + $0x1d8] sm:$0xff] }
 0x276   : > { %v2425_v4 = vadd.f32 %v4704_v47, %v2354_v30  ;;  %v3434_v23 = vpack.c.bf16 %v2484_v56, %v2483_v52  ;;  %v2487_v42 = vmax.f32 %v2423_v57, 0.0  ;;  %v2426_v8 = vadd.f32 %v4704_v47, %v2355_v18  ;;  %v2300_v56 = vld [vmem:[#allocation2 + $0xd0] sm:$0xff] }
 0x277   : > { %v2488_v49 = vmax.f32 %v2424_v61, 0.0  ;;  %v3439_v15 = vpack.c.bf16 %v2486_v1, %v2485_v50  ;;  %v2357_v54 = vmul.f32 %v4697_v55, %v2286_v11  ;;  %v2427_v20 = vadd.f32 %v4704_v47, %v2356_v5  ;;  %v2301_v50 = vld [vmem:[#allocation2 + $0xb8] sm:$0xff] }
 0x278   : > { %v2489_v16 = vmax.f32 %v2425_v4, 0.0  ;;  %3542 = vst [vmem:[%s4343_s8 + $0x60] sm:$0xff] %v3434_v23   ;;  %v2490_v45 = vmax.f32 %v2426_v8, 0.0  ;;  %v2358_v35 = vmul.f32 %v4697_v55, %v2287_v10  ;;  %v2359_v24 = vmul.f32 %v4697_v55, %v2288_v58  ;;  %v2302_v8 = vld [vmem:[#allocation2 + $0x88] sm:$0xff] }
 0x279   : > { %v3444_v21 = vpack.c.bf16 %v2488_v49, %v2487_v42  ;;  %3543 = vst [vmem:[%s4343_s8 + $0x68] sm:$0xff] %v3439_v15   ;;  %v2428_v14 = vadd.f32 %v4704_v47, %v2357_v54  ;;  %v2491_v3 = vmax.f32 %v2427_v20, 0.0  ;;  %v2360_v25 = vmul.f32 %v4697_v55, %v2289_v9  ;;  %v2303_v54 = vld [vmem:[#allocation2 + $0xa8] sm:$0xff] }
 0x27a   : > { %v2361_v27 = vmul.f32 %v4697_v55, %v2290_v12  ;;  %v3449_v32 = vpack.c.bf16 %v2490_v45, %v2489_v16  ;;  %v2429_v0 = vadd.f32 %v4704_v47, %v2358_v35  ;;  %v2430_v59 = vadd.f32 %v4704_v47, %v2359_v24  ;;  %v2304_v20 = vld [vmem:[#allocation2 + $0x1c8] sm:$0xff]  ;;  %v2305_v24 = vld [vmem:[#allocation2 + $0x170] sm:$0xff] }
 0x27b   : > { %3544 = vst [vmem:[%s4343_s8 + $0x70] sm:$0xff] %v3444_v21   ;;  %v2362_v2 = vmul.f32 %v4697_v55, %v2291_v17  ;;  %v2492_v36 = vmax.f32 %v2428_v14, 0.0  ;;  %v2431_v39 = vadd.f32 %v4704_v47, %v2360_v25  ;;  %v2363_v33 = vmul.f32 %v4697_v55, %v2292_v46  ;;  %v2306_v46 = vld [vmem:[#allocation2 + $0x178] sm:$0xff] }
 0x27c   : > { %v2432_v34 = vadd.f32 %v4704_v47, %v2361_v27  ;;  %3545 = vst [vmem:[%s4343_s8 + $0x78] sm:$0xff] %v3449_v32   ;;  %v2493_v37 = vmax.f32 %v2429_v0, 0.0  ;;  %v2494_v7 = vmax.f32 %v2430_v59, 0.0  ;;  %v2364_v26 = vmul.f32 %v4697_v55, %v2293_v29  ;;  %v2307_v29 = vld [vmem:[#allocation2 + $0x68] sm:$0xff] }
 0x27d   : > { %v2433_v31 = vadd.f32 %v4704_v47, %v2362_v2  ;;  %v3454_v22 = vpack.c.bf16 %v2492_v36, %v2491_v3  ;;  %v2495_v44 = vmax.f32 %v2431_v39, 0.0  ;;  %v2434_v51 = vadd.f32 %v4704_v47, %v2363_v33  ;;  %v2308_v36 = vld [vmem:[#allocation2 + $0x190] sm:$0xff] }
 0x27e   : > { %v2496_v48 = vmax.f32 %v2432_v34, 0.0  ;;  %v3459_v38 = vpack.c.bf16 %v2494_v7, %v2493_v37  ;;  %v2365_v13 = vmul.f32 %v4697_v55, %v2294_v60  ;;  %v2435_v43 = vadd.f32 %v4704_v47, %v2364_v26  ;;  %v2309_v37 = vld [vmem:[#allocation2 + $0x198] sm:$0xff] }
 0x27f   : > { %v2497_v52 = vmax.f32 %v2433_v31, 0.0  ;;  %3546 = vst [vmem:[%s4343_s8 + $0x80] sm:$0xff] %v3454_v22   ;;  %v2498_v62 = vmax.f32 %v2434_v51, 0.0  ;;  %v2366_v19 = vmul.f32 %v4697_v55, %v2295_v40  ;;  %v2367_v30 = vmul.f32 %v4697_v55, %v2296_v41  ;;  %v2310_v51 = vld [vmem:[#allocation2 + $0x38] sm:$0xff] }
 0x280   : > { %v3464_v28 = vpack.c.bf16 %v2496_v48, %v2495_v44  ;;  %3547 = vst [vmem:[%s4343_s8 + $0x88] sm:$0xff] %v3459_v38   ;;  %v2436_v57 = vadd.f32 %v4704_v47, %v2365_v13  ;;  %v2499_v61 = vmax.f32 %v2435_v43, 0.0  ;;  %v2368_v18 = vmul.f32 %v4697_v55, %v2297_v63  ;;  %v2311_v13 = vld [vmem:[#allocation2 + $0xc0] sm:$0xff] }
 0x281   : > { %v2369_v11 = vmul.f32 %v4697_v55, %v2298_v6  ;;  %v3469_v1 = vpack.c.bf16 %v2498_v62, %v2497_v52  ;;  %v2437_v4 = vadd.f32 %v4704_v47, %v2366_v19  ;;  %v2438_v5 = vadd.f32 %v4704_v47, %v2367_v30  ;;  %v2312_v43 = vld [vmem:[#allocation2 + $0x1c0] sm:$0xff]  ;;  %v2313_v30 = vld [vmem:[#allocation2 + $0x158] sm:$0xff] }
 0x282   : > { %3548 = vst [vmem:[%s4343_s8 + $0x90] sm:$0xff] %v3464_v28   ;;  %v2370_v10 = vmul.f32 %v4697_v55, %v2299_v53  ;;  %v2500_v58 = vmax.f32 %v2436_v57, 0.0  ;;  %v2439_v23 = vadd.f32 %v4704_v47, %v2368_v18  ;;  %v2371_v49 = vmul.f32 %v4697_v55, %v2300_v56  ;;  %v2314_v56 = vld [vmem:[#allocation2 + $0x10] sm:$0xff] }
 0x283   : > { %v2440_v42 = vadd.f32 %v4704_v47, %v2369_v11  ;;  %3549 = vst [vmem:[%s4343_s8 + $0x98] sm:$0xff] %v3469_v1   ;;  %v2501_v9 = vmax.f32 %v2437_v4, 0.0  ;;  %v2502_v12 = vmax.f32 %v2438_v5, 0.0  ;;  %v2372_v16 = vmul.f32 %v4697_v55, %v2301_v50  ;;  %v2315_v50 = vld [vmem:[#allocation2 + $0x58] sm:$0xff] }
 0x284   : > { %v2441_v15 = vadd.f32 %v4704_v47, %v2370_v10  ;;  %v3474_v17 = vpack.c.bf16 %v2500_v58, %v2499_v61  ;;  %v2503_v21 = vmax.f32 %v2439_v23, 0.0  ;;  %v2442_v35 = vadd.f32 %v4704_v47, %v2371_v49  ;;  %v2316_v58 = vld [vmem:[#allocation2 + $0xa0] sm:$0xff] }
 0x285   : > { %v2504_v45 = vmax.f32 %v2440_v42, 0.0  ;;  %v3479_v14 = vpack.c.bf16 %v2502_v12, %v2501_v9  ;;  %v2373_v25 = vmul.f32 %v4697_v55, %v2302_v8  ;;  %v2443_v27 = vadd.f32 %v4704_v47, %v2372_v16 }
 0x286   : > { %v2505_v3 = vmax.f32 %v2441_v15, 0.0  ;;  %3550 = vst [vmem:[%s4343_s8 + $0xa0] sm:$0xff] %v3474_v17   ;;  %v2506_v0 = vmax.f32 %v2442_v35, 0.0  ;;  %v2374_v59 = vmul.f32 %v4697_v55, %v2303_v54  ;;  %v2375_v2 = vmul.f32 %v4697_v55, %v2304_v20 }
 0x287   : > { %v3484_v32 = vpack.c.bf16 %v2504_v45, %v2503_v21  ;;  %3551 = vst [vmem:[%s4343_s8 + $0xa8] sm:$0xff] %v3479_v14   ;;  %v2444_v39 = vadd.f32 %v4704_v47, %v2373_v25  ;;  %v2507_v34 = vmax.f32 %v2443_v27, 0.0  ;;  %v2376_v33 = vmul.f32 %v4697_v55, %v2305_v24 }
 0x288   : > { %v2377_v60 = vmul.f32 %v4697_v55, %v2306_v46  ;;  %v3489_v7 = vpack.c.bf16 %v2506_v0, %v2505_v3  ;;  %v2445_v31 = vadd.f32 %v4704_v47, %v2374_v59  ;;  %v2446_v26 = vadd.f32 %v4704_v47, %v2375_v2 }
 0x289   : > { %3552 = vst [vmem:[%s4343_s8 + $0xb0] sm:$0xff] %v3484_v32   ;;  %v2378_v40 = vmul.f32 %v4697_v55, %v2307_v29  ;;  %v2508_v41 = vmax.f32 %v2444_v39, 0.0  ;;  %v2447_v22 = vadd.f32 %v4704_v47, %v2376_v33  ;;  %v2379_v48 = vmul.f32 %v4697_v55, %v2308_v36 }
 0x28a   : > { %v2448_v44 = vadd.f32 %v4704_v47, %v2377_v60  ;;  %3553 = vst [vmem:[%s4343_s8 + $0xb8] sm:$0xff] %v3489_v7   ;;  %v2509_v63 = vmax.f32 %v2445_v31, 0.0  ;;  %v2510_v6 = vmax.f32 %v2446_v26, 0.0  ;;  %v2380_v52 = vmul.f32 %v4697_v55, %v2309_v37 }
 0x28b   : > { %v2449_v38 = vadd.f32 %v4704_v47, %v2378_v40  ;;  %v3494_v53 = vpack.c.bf16 %v2508_v41, %v2507_v34  ;;  %v2511_v28 = vmax.f32 %v2447_v22, 0.0  ;;  %v2450_v19 = vadd.f32 %v4704_v47, %v2379_v48 }
 0x28c   : > { %v2512_v62 = vmax.f32 %v2448_v44, 0.0  ;;  %v3499_v57 = vpack.c.bf16 %v2510_v6, %v2509_v63  ;;  %v2381_v18 = vmul.f32 %v4697_v55, %v2310_v51  ;;  %v2451_v11 = vadd.f32 %v4704_v47, %v2380_v52 }
 0x28d   : > { %v2513_v61 = vmax.f32 %v2449_v38, 0.0  ;;  %3554 = vst [vmem:[%s4343_s8 + $0xc0] sm:$0xff] %v3494_v53   ;;  %v2514_v4 = vmax.f32 %v2450_v19, 0.0  ;;  %v2382_v5 = vmul.f32 %v4697_v55, %v2311_v13  ;;  %v2383_v10 = vmul.f32 %v4697_v55, %v2312_v43 }
 0x28e   : > { %v3504_v1 = vpack.c.bf16 %v2512_v62, %v2511_v28  ;;  %3555 = vst [vmem:[%s4343_s8 + $0xc8] sm:$0xff] %v3499_v57   ;;  %v2452_v23 = vadd.f32 %v4704_v47, %v2381_v18  ;;  %v2515_v42 = vmax.f32 %v2451_v11, 0.0  ;;  %v2384_v49 = vmul.f32 %v4697_v55, %v2313_v30 }
 0x28f   : > { %v2385_v8 = vmul.f32 %v4697_v55, %v2314_v56  ;;  %v3509_v9 = vpack.c.bf16 %v2514_v4, %v2513_v61  ;;  %v2453_v12 = vadd.f32 %v4704_v47, %v2382_v5  ;;  %v2454_v15 = vadd.f32 %v4704_v47, %v2383_v10 }
 0x290   : > { %3556 = vst [vmem:[%s4343_s8 + $0xd0] sm:$0xff] %v3504_v1   ;;  %v2386_v16 = vmul.f32 %v4697_v55, %v2315_v50  ;;  %v2516_v54 = vmax.f32 %v2452_v23, 0.0  ;;  %v2455_v20 = vadd.f32 %v4704_v47, %v2384_v49  ;;  %v2387_v21 = vmul.f32 %v4697_v55, %v2316_v58 }
 0x291   : > { %v2456_v17 = vadd.f32 %v4704_v47, %v2385_v8  ;;  %3557 = vst [vmem:[%s4343_s8 + $0xd8] sm:$0xff] %v3509_v9   ;;  %v2517_v45 = vmax.f32 %v2453_v12, 0.0  ;;  %v2518_v35 = vmax.f32 %v2454_v15, 0.0 }
 0x292   : > { %v2457_v24 = vadd.f32 %v4704_v47, %v2386_v16  ;;  %v3514_v46 = vpack.c.bf16 %v2516_v54, %v2515_v42  ;;  %v2519_v14 = vmax.f32 %v2455_v20, 0.0  ;;  %v2458_v25 = vadd.f32 %v4704_v47, %v2387_v21 }
 0x293   : > { %v2520_v3 = vmax.f32 %v2456_v17, 0.0  ;;  %v3519_v27 = vpack.c.bf16 %v2518_v35, %v2517_v45 }
 0x294   : > { %v2521_v29 = vmax.f32 %v2457_v24, 0.0  ;;  %3558 = vst [vmem:[%s4343_s8 + $0xe0] sm:$0xff] %v3514_v46   ;;  %v2522_v0 = vmax.f32 %v2458_v25, 0.0 }
 0x295   : > { %v3524_v32 = vpack.c.bf16 %v2520_v3, %v2519_v14  ;;  %3559 = vst [vmem:[%s4343_s8 + $0xe8] sm:$0xff] %v3519_v27  }
 0x296   : > { %v3529_v59 = vpack.c.bf16 %v2522_v0, %v2521_v29 }
 0x297   : > { %3560 = vst [vmem:[%s4343_s8 + $0xf0] sm:$0xff] %v3524_v32  }
 0x298   : > { %3561 = vst [vmem:[%s4343_s8 + $0xf8] sm:$0xff] %v3529_v59  }
 0x299 PF: > { %s14_s21 = sadd.s32 1, %s3981_s21   ;;  %s4890_s15 = smov %s3961_s16 }
 0x29a   : > { %p11_p0 = scmp.ge.s32.totalorder %s14_s21, 8   ;;  %s4891_s16 = smov %s4061_s28 }
 0x29b   : > { %s4892_s17 = smov %s3973_s19  ;;  %s4893_s18 = smov %s3977_s20 }
 0x29c   : > { %s4894_s19 = smov %s4897_s22  ;;  %s4895_s20 = smov %s4901_s23 }
 0x29d   :  { %13 = sbr.rel (!%p11_p0) target bundleno = 4 (0x4), region = 120 }

</bundles_post_ra>
